<compile_context>
chip_gen: v7x
topology: tpu7x:2x2x1
jax: 0.10.0
libtpu: 0.0.40
codegen_flags: <defaults>
</compile_context>

<pallas_src>
import jax
import jax.numpy as jnp
import numpy as np
from jax.experimental import pallas as pl
from jax.experimental.pallas import tpu as pltpu  # noqa: F401  (TPU backend)


# Conv GEMM dims: K = Cin*5*5 (+1 folded-bias row) padded to 32 / 160,
# Cout padded to 8 / 16.  FC feature dims padded to 128 lanes.
COUT1, COUT1_PAD, K1, K1_PAD = 6, 8, 25, 32
COUT2, COUT2_PAD, K2, K2_PAD = 16, 16, 150, 160
FC1_OUT, FC2_OUT, FC3_OUT, FC_PAD = 120, 84, 10, 128
LANE = 128


def _round_up(x, m):
    return -(-x // m) * m


# ----------------------------------------------------------------------------
# Pallas kernels.  Every operand fits a single VMEM block -> grid-less calls.
# ----------------------------------------------------------------------------
def _make_conv_pool_norm_kernel(cout, m, m_pad):
    """conv (one wide phase-merged GEMM, bias folded into K) + ReLU + 2x2 maxpool
    + global min/max normalisation.

    p_ref:     (K_pad, 4*m_pad)    phase-blocked im2col patches (+ ones bias row)
    w_ref:     (Cout_pad, K_pad)   packed weights (bias in column K)
    conv_ref:  (Cout_pad, 4*m_pad) raw conv+bias, all 4 pool phases
    pool_ref:  (Cout_pad, m_pad)   maxpool2x2(relu(conv))
    npool_ref: (Cout_pad, m_pad)   (pool - min) / (max - min), masked min/max
    """

    def kernel(p_ref, w_ref, conv_ref, pool_ref, npool_ref):
        acc = jnp.dot(w_ref[...], p_ref[...], preferred_element_type=jnp.float32)
        conv_ref[...] = acc
        r = jnp.maximum(acc, 0.0)                  # ReLU (monotone -> ok before max)
        pooled = jnp.maximum(
            jnp.maximum(r[:, 0:m_pad], r[:, m_pad:2 * m_pad]),
            jnp.maximum(r[:, 2 * m_pad:3 * m_pad], r[:, 3 * m_pad:4 * m_pad]))
        pool_ref[...] = pooled
        row = jax.lax.broadcasted_iota(jnp.int32, pooled.shape, 0)
        col = jax.lax.broadcasted_iota(jnp.int32, pooled.shape, 1)
        valid = (row < cout) & (col < m)           # mask out Cout / M' padding
        mn = jnp.min(jnp.where(valid, pooled, jnp.inf), keepdims=True)
        mx = jnp.max(jnp.where(valid, pooled, -jnp.inf), keepdims=True)
        npool_ref[...] = (pooled - mn) * pl.reciprocal(mx - mn, approx=True)

    return kernel


def _make_conv2_fc_kernel(n, cout, sp, m, m_pad):
    """Fused conv2 stage + in-kernel flatten + fc1 -> norm -> fc2 -> norm -> fc3.

    sp = pooled spatial positions per example (4*4 = 16), m = n*sp valid columns.
    FC weights are pre-transposed (in, out) and zero-padded to 128 lanes; the
    zero rows in fw2/fw3 make the padded (garbage) lanes of the normalised
    activations harmless.
    """

    def kernel(p_ref, w_ref, fw1_ref, fb1_ref, fw2_ref, fb2_ref, fw3_ref, fb3_ref,
               conv_ref, pool_ref, npool_ref, flat_ref,
               fc1_ref, nfc1_ref, fc2_ref, nfc2_ref, fc3_ref):
        # ---- conv2 + folded bias over all 4 pool phases: one MXU pass --------
        acc = jnp.dot(w_ref[...], p_ref[...], preferred_element_type=jnp.float32)
        conv_ref[...] = acc
        r = jnp.maximum(acc, 0.0)
        pooled = jnp.maximum(
            jnp.maximum(r[:, 0:m_pad], r[:, m_pad:2 * m_pad]),
            jnp.maximum(r[:, 2 * m_pad:3 * m_pad], r[:, 3 * m_pad:4 * m_pad]))
        pool_ref[...] = pooled
        row = jax.lax.broadcasted_iota(jnp.int32, pooled.shape, 0)
        col = jax.lax.broadcasted_iota(jnp.int32, pooled.shape, 1)
        valid = (row < cout) & (col < m)
        mn = jnp.min(jnp.where(valid, pooled, jnp.inf), keepdims=True)
        mx = jnp.max(jnp.where(valid, pooled, -jnp.inf), keepdims=True)
        np2 = (pooled - mn) * pl.reciprocal(mx - mn, approx=True)
        npool_ref[...] = np2

        # ---- flatten (c ; b*sp+s) -> (b ; c*sp+s): tiny static sub-tile copies
        for b in range(n):
            for c in range(cout):
                flat_ref[b, c * sp:(c + 1) * sp] = np2[c, b * sp:(b + 1) * sp]
        x = flat_ref[...]                                   # (n, 256)

        # ---- fc1 -> norm -> fc2 -> norm -> fc3 (feature dims padded to 128) --
        h1 = jnp.maximum(
            jnp.dot(x, fw1_ref[...], preferred_element_type=jnp.float32)
            + fb1_ref[...], 0.0)
        fc1_ref[...] = h1
        lane = jax.lax.broadcasted_iota(jnp.int32, h1.shape, 1)
        mn1 = jnp.min(jnp.where(lane < FC1_OUT, h1, jnp.inf), keepdims=True)
        mx1 = jnp.max(jnp.where(lane < FC1_OUT, h1, -jnp.inf), keepdims=True)
        n1 = (h1 - mn1) * pl.reciprocal(mx1 - mn1, approx=True)
        nfc1_ref[...] = n1

        h2 = jnp.maximum(
            jnp.dot(n1, fw2_ref[...], preferred_element_type=jnp.float32)
            + fb2_ref[...], 0.0)
        fc2_ref[...] = h2
        mn2 = jnp.min(jnp.where(lane < FC2_OUT, h2, jnp.inf), keepdims=True)
        mx2 = jnp.max(jnp.where(lane < FC2_OUT, h2, -jnp.inf), keepdims=True)
        n2 = (h2 - mn2) * pl.reciprocal(mx2 - mn2, approx=True)
        nfc2_ref[...] = n2

        fc3_ref[...] = (jnp.dot(n2, fw3_ref[...], preferred_element_type=jnp.float32)
                        + fb3_ref[...])

    return kernel


# ----------------------------------------------------------------------------
# XLA glue: phase-grouped im2col (one conv_general_dilated_patches call) and
# layout restoration of the lane-dense kernel outputs to NCHW.
# ----------------------------------------------------------------------------
def _phase_patch_slab(x, k_pad):
    """x:(N,C,H,W) -> (k_pad, 4*m_pad) phase-blocked im2col slab.

    Lane layout: ph*m_pad + n*OHp*OWp + io*OWp + jo, with ph = 2*di + dj.
    Row layout:  k = c*25 + kh*5 + kw (matches the packed conv weight), plus a
    ones row at k = C*25 (valid columns only) carrying the folded bias.
    """
    n, c, h, w = x.shape
    kk = c * 25
    oh, ow = h - 4, w - 4
    ohp, owp = oh // 2, ow // 2
    m = n * ohp * owp
    m_pad = _round_up(m, LANE)
    pats = jax.lax.conv_general_dilated_patches(
        x, (5, 5), (1, 1), "VALID",
        dimension_numbers=("NCHW", "OIHW", "NCHW"),
        precision=jax.lax.Precision.HIGHEST)                  # (N, C*25, OH, OW)
    p = pats.reshape(n, kk, ohp, 2, owp, 2)                   # (n, k, io, di, jo, dj)
    p = p.transpose(3, 5, 1, 0, 2, 4)                         # (di, dj, k, n, io, jo)
    p = p.reshape(4, kk, m)
    p = jnp.concatenate([p, jnp.ones((4, 1, m), x.dtype)], axis=1)   # bias row
    p = jnp.pad(p, ((0, 0), (0, k_pad - kk - 1), (0, m_pad - m)))
    p = p.transpose(1, 0, 2).reshape(k_pad, 4 * m_pad)
    return p, m, m_pad, ohp, owp


def _unphase(slab, n, cout, ohp, owp, m, m_pad):
    """(Cout_pad, 4*m_pad) raw conv slab -> (N, cout, 2*OHp, 2*OWp) NCHW."""
    t = slab.reshape(slab.shape[0], 4, m_pad)[:cout, :, :m]   # (c, ph, col)
    t = t.reshape(cout, 2, 2, n, ohp, owp)                    # (c, di, dj, n, io, jo)
    t = t.transpose(3, 0, 4, 1, 5, 2)                         # (n, c, io, di, jo, dj)
    return t.reshape(n, cout, 2 * ohp, 2 * owp)


def _unflatten(slab, n, cout, ohp, owp, m):
    """(Cout_pad, m_pad) pooled slab -> (N, cout, OHp, OWp) NCHW."""
    return slab[:cout, :m].reshape(cout, n, ohp, owp).transpose(1, 0, 2, 3)


# ----------------------------------------------------------------------------
# Parameters (pre-packed into kernel layouts once, at init).
# ----------------------------------------------------------------------------
def _pack_conv(w, b, cout_pad, k_pad):
    cout = w.shape[0]
    kk = w.shape[1] * w.shape[2] * w.shape[3]
    mat = jnp.zeros((cout_pad, k_pad), jnp.float32)
    mat = mat.at[:cout, :kk].set(w.reshape(cout, kk))
    mat = mat.at[:cout, kk].set(b)                    # folded bias column
    return mat


def _pack_fc(w_t, b, in_pad, out_pad):
    win, wout = w_t.shape
    wp = jnp.zeros((in_pad, out_pad), jnp.float32).at[:win, :wout].set(w_t)
    bp = jnp.zeros((1, out_pad), jnp.float32).at[0, :wout].set(b)
    return wp, bp


def init_params(key):
    """Deterministic synthetic parameters (PyTorch-default-style uniform init),
    pre-packed so the jitted forward does no weight .T / .reshape."""
    def uni(k, shape, fan_in):
        bound = 1.0 / np.sqrt(float(fan_in))
        return jax.random.uniform(k, shape, jnp.float32, -bound, bound)

    ks = jax.random.split(key, 10)
    conv1_w, conv1_b = uni(ks[0], (6, 1, 5, 5), K1), uni(ks[1], (6,), K1)
    conv2_w, conv2_b = uni(ks[2], (16, 6, 5, 5), K2), uni(ks[3], (16,), K2)
    fc1_wt, fc1_b = uni(ks[4], (256, FC1_OUT), 256), uni(ks[5], (FC1_OUT,), 256)
    fc2_wt, fc2_b = uni(ks[6], (FC1_OUT, FC2_OUT), FC1_OUT), uni(ks[7], (FC2_OUT,), FC1_OUT)
    fc3_wt, fc3_b = uni(ks[8], (FC2_OUT, FC3_OUT), FC2_OUT), uni(ks[9], (FC3_OUT,), FC2_OUT)
    fc1_wp, fc1_bp = _pack_fc(fc1_wt, fc1_b, 256, FC_PAD)
    fc2_wp, fc2_bp = _pack_fc(fc2_wt, fc2_b, FC_PAD, FC_PAD)
    fc3_wp, fc3_bp = _pack_fc(fc3_wt, fc3_b, FC_PAD, FC_PAD)
    return {
        "conv1_wmat": _pack_conv(conv1_w, conv1_b, COUT1_PAD, K1_PAD),
        "conv2_wmat": _pack_conv(conv2_w, conv2_b, COUT2_PAD, K2_PAD),
        "fc1_w": fc1_wp, "fc1_b": fc1_bp,
        "fc2_w": fc2_wp, "fc2_b": fc2_bp,
        "fc3_w": fc3_wp, "fc3_b": fc3_bp,
    }


# ----------------------------------------------------------------------------
# Forward pass (2 pallas_calls total).
# ----------------------------------------------------------------------------
def garment_classifier_forward(params, x):
    """x: (N, 1, 28, 28) float32.  Returns the same 12-tuple as the nn.Module."""
    n = x.shape[0]

    # stage 1: conv1 + relu + 2x2 maxpool + normalize            (pallas_call #1)
    p1, m1, m1_pad, ohp1, owp1 = _phase_patch_slab(x, K1_PAD)
    conv1_raw, pool1_slab, npool1_slab = pl.pallas_call(
        _make_conv_pool_norm_kernel(COUT1, m1, m1_pad),
        out_shape=(
            jax.ShapeDtypeStruct((COUT1_PAD, 4 * m1_pad), jnp.float32),
            jax.ShapeDtypeStruct((COUT1_PAD, m1_pad), jnp.float32),
            jax.ShapeDtypeStruct((COUT1_PAD, m1_pad), jnp.float32),
        ),
    )(p1, params["conv1_wmat"])
    conv1_out = _unphase(conv1_raw, n, COUT1, ohp1, owp1, m1, m1_pad)
    pool_out = _unflatten(pool1_slab, n, COUT1, ohp1, owp1, m1)
    normalised_pool_out = _unflatten(npool1_slab, n, COUT1, ohp1, owp1, m1)

    # stage 2: conv2 + relu + pool + normalize + flatten + fc1/fc2/fc3  (call #2)
    p2, m2, m2_pad, ohp2, owp2 = _phase_patch_slab(normalised_pool_out, K2_PAD)
    sp2 = ohp2 * owp2                                 # 16 pooled positions / example
    (conv2_raw, pool2_slab, npool2_slab, flattened,
     fc1_pad, nfc1_pad, fc2_pad, nfc2_pad, fc3_pad) = pl.pallas_call(
        _make_conv2_fc_kernel(n, COUT2, sp2, m2, m2_pad),
        out_shape=(
            jax.ShapeDtypeStruct((COUT2_PAD, 4 * m2_pad), jnp.float32),
            jax.ShapeDtypeStruct((COUT2_PAD, m2_pad), jnp.float32),
            jax.ShapeDtypeStruct((COUT2_PAD, m2_pad), jnp.float32),
            jax.ShapeDtypeStruct((n, COUT2 * sp2), jnp.float32),
            jax.ShapeDtypeStruct((n, FC_PAD), jnp.float32),
            jax.ShapeDtypeStruct((n, FC_PAD), jnp.float32),
            jax.ShapeDtypeStruct((n, FC_PAD), jnp.float32),
            jax.ShapeDtypeStruct((n, FC_PAD), jnp.float32),
            jax.ShapeDtypeStruct((n, FC_PAD), jnp.float32),
        ),
    )(p2, params["conv2_wmat"],
      params["fc1_w"], params["fc1_b"],
      params["fc2_w"], params["fc2_b"],
      params["fc3_w"], params["fc3_b"])

    conv2_inter = _unphase(conv2_raw, n, COUT2, ohp2, owp2, m2, m2_pad)
    conv2_out = _unflatten(pool2_slab, n, COUT2, ohp2, owp2, m2)
    normalised_conv2_out = _unflatten(npool2_slab, n, COUT2, ohp2, owp2, m2)
    fc1_out = fc1_pad[:, :FC1_OUT]
    normalised_fc1_out = nfc1_pad[:, :FC1_OUT]
    fc2_out = fc2_pad[:, :FC2_OUT]
    normalised_fc2_out = nfc2_pad[:, :FC2_OUT]
    fc3_out = fc3_pad[:, :FC3_OUT]

    return (conv1_out, pool_out, normalised_pool_out, conv2_inter, conv2_out,
            normalised_conv2_out, flattened, fc1_out, normalised_fc1_out,
            fc2_out, normalised_fc2_out, fc3_out)


# ----------------------------------------------------------------------------
# Pure-JAX reference (for validation only).
# ----------------------------------------------------------------------------
def _reference_forward(params, x):
    hi = jax.lax.Precision.HIGHEST
    w1 = params["conv1_wmat"][:COUT1, :K1].reshape(6, 1, 5, 5)
    b1 = params["conv1_wmat"][:COUT1, K1]
    w2 = params["conv2_wmat"][:COUT2, :K2].reshape(16, 6, 5, 5)
    b2 = params["conv2_wmat"][:COUT2, K2]
    fw1, fb1 = params["fc1_w"][:, :FC1_OUT], params["fc1_b"][:, :FC1_OUT]
    fw2, fb2 = params["fc2_w"][:FC1_OUT, :FC2_OUT], params["fc2_b"][:, :FC2_OUT]
    fw3, fb3 = params["fc3_w"][:FC2_OUT, :FC3_OUT], params["fc3_b"][:, :FC3_OUT]

    def conv(t, w, b):
        y = jax.lax.conv_general_dilated(
            t, w, (1, 1), "VALID",
            dimension_numbers=("NCHW", "OIHW", "NCHW"), precision=hi)
        return y + b[None, :, None, None]

    def pool(t):
        return jnp.max(jnp.stack([t[:, :, di::2, dj::2]
                                  for di in range(2) for dj in range(2)]), axis=0)

    def norm(t):
        return (t - jnp.min(t)) / (jnp.max(t) - jnp.min(t))

    c1 = conv(x, w1, b1)
    p1 = pool(jnp.maximum(c1, 0.0))
    np1 = norm(p1)
    c2i = conv(np1, w2, b2)
    c2 = pool(jnp.maximum(c2i, 0.0))
    nc2 = norm(c2)
    fl = nc2.reshape(-1, 256)
    f1 = jnp.maximum(jnp.dot(fl, fw1, precision=hi) + fb1, 0.0)
    nf1 = norm(f1)
    f2 = jnp.maximum(jnp.dot(nf1, fw2, precision=hi) + fb2, 0.0)
    nf2 = norm(f2)
    f3 = jnp.dot(nf2, fw3, precision=hi) + fb3
    return (c1, p1, np1, c2i, c2, nc2, fl, f1, nf1, f2, nf2, f3)


if __name__ == "__main__":
    key = jax.random.PRNGKey(0)
    k_param, k_x = jax.random.split(key)

    params = init_params(k_param)
    # MNIST-shaped input: 28x28 is required so the flatten yields 16*4*4 = 256.
    x = jax.random.normal(k_x, (2, 1, 28, 28), dtype=jnp.float32)

    outs = jax.jit(garment_classifier_forward)(params, x)
    outs = jax.tree_util.tree_map(jax.block_until_ready, outs)

    expected_shapes = [(2, 6, 24, 24), (2, 6, 12, 12), (2, 6, 12, 12),
                       (2, 16, 8, 8), (2, 16, 4, 4), (2, 16, 4, 4),
                       (2, 256), (2, 120), (2, 120), (2, 84), (2, 84), (2, 10)]
    assert [tuple(o.shape) for o in outs] == expected_shapes

    refs = _reference_forward(params, x)
    for got, want in zip(outs, refs):
        np.testing.assert_allclose(np.asarray(got), np.asarray(want),
                                   rtol=2e-2, atol=2e-2)

    print("KERNEL_OK")
</pallas_src>

<mosaic_0001>
module attributes {stable_mosaic.version = 11 : i64} {
  func.func @kernel(%arg0: memref<32x1536xf32, #tpu.memory_space<vmem>>, %arg1: memref<8x32xf32, #tpu.memory_space<vmem>>, %arg2: memref<8x1536xf32, #tpu.memory_space<vmem>>, %arg3: memref<8x384xf32, #tpu.memory_space<vmem>>, %arg4: memref<8x384xf32, #tpu.memory_space<vmem>>) attributes {dimension_semantics = [], scalar_prefetch = 0 : i64, scratch_operands = 0 : i64, tpu.core_type = #tpu.core_type<tc>} {
    %c0 = arith.constant 0 : index
    %c0_0 = arith.constant 0 : index
    %0 = vector.load %arg1[%c0, %c0_0] : memref<8x32xf32, #tpu.memory_space<vmem>>, vector<8x32xf32>
    %c0_1 = arith.constant 0 : index
    %c0_2 = arith.constant 0 : index
    %1 = vector.load %arg0[%c0_1, %c0_2] : memref<32x1536xf32, #tpu.memory_space<vmem>>, vector<32x1536xf32>
    %cst = arith.constant dense<0.000000e+00> : vector<8x1536xf32>
    %2 = tpu.matmul %0, %1, %cst {dimension_numbers = #tpu.dot_dimension_numbers<[1], [0], [0], [1], [0, 0, 1, 1], [], []>} : vector<8x32xf32>, vector<32x1536xf32>, vector<8x1536xf32> -> vector<8x1536xf32>
    %c0_3 = arith.constant 0 : index
    %c0_4 = arith.constant 0 : index
    %3 = vector.load %arg2[%c0_3, %c0_4] : memref<8x1536xf32, #tpu.memory_space<vmem>>, vector<8x1536xf32>
    tpu.vector_store %arg2[%c0_3, %c0_4], %2 {strides = array<i32>} : memref<8x1536xf32, #tpu.memory_space<vmem>>, vector<8x1536xf32>,
    %cst_5 = arith.constant 0.000000e+00 : f32
    %4 = vector.broadcast %cst_5 : f32 to vector<8x1536xf32>
    %5 = arith.maximumf %2, %4 : vector<8x1536xf32>
    %6 = vector.extract_strided_slice %5 {offsets = [0, 0], sizes = [8, 384], strides = [1, 1]} : vector<8x1536xf32> to vector<8x384xf32>
    %7 = vector.extract_strided_slice %5 {offsets = [0, 384], sizes = [8, 384], strides = [1, 1]} : vector<8x1536xf32> to vector<8x384xf32>
    %8 = arith.maximumf %6, %7 : vector<8x384xf32>
    %9 = vector.extract_strided_slice %5 {offsets = [0, 768], sizes = [8, 384], strides = [1, 1]} : vector<8x1536xf32> to vector<8x384xf32>
    %10 = vector.extract_strided_slice %5 {offsets = [0, 1152], sizes = [8, 384], strides = [1, 1]} : vector<8x1536xf32> to vector<8x384xf32>
    %11 = arith.maximumf %9, %10 : vector<8x384xf32>
    %12 = arith.maximumf %8, %11 : vector<8x384xf32>
    %c0_6 = arith.constant 0 : index
    %c0_7 = arith.constant 0 : index
    %13 = vector.load %arg3[%c0_6, %c0_7] : memref<8x384xf32, #tpu.memory_space<vmem>>, vector<8x384xf32>
    tpu.vector_store %arg3[%c0_6, %c0_7], %12 {strides = array<i32>} : memref<8x384xf32, #tpu.memory_space<vmem>>, vector<8x384xf32>,
    %14 = tpu.iota {dimensions = array<i32: 0>} : vector<8x384xi32>
    %15 = tpu.iota {dimensions = array<i32: 1>} : vector<8x384xi32>
    %c6_i32 = arith.constant 6 : i32
    %16 = vector.broadcast %c6_i32 : i32 to vector<8x384xi32>
    %17 = arith.cmpi slt, %14, %16 : vector<8x384xi32>
    %c288_i32 = arith.constant 288 : i32
    %18 = vector.broadcast %c288_i32 : i32 to vector<8x384xi32>
    %19 = arith.cmpi slt, %15, %18 : vector<8x384xi32>
    %20 = arith.andi %17, %19 : vector<8x384xi1>
    %cst_8 = arith.constant 0x7F800000 : f32
    %21 = vector.broadcast %cst_8 : f32 to vector<8x384xf32>
    %22 = arith.select %20, %12, %21 : vector<8x384xi1>, vector<8x384xf32>
    %23 = vector.shape_cast %22 : vector<8x384xf32> to vector<1x8x384xf32>
    %cst_9 = arith.constant dense<0x7F800000> : vector<1xf32>
    %24 = vector.multi_reduction <minimumf>, %23, %cst_9 [1, 2] : vector<1x8x384xf32> to vector<1xf32>
    %25 = vector.shape_cast %24 : vector<1xf32> to vector<1x1x1xf32>
    %26 = vector.extract %25[0, 0, 0] : f32 from vector<1x1x1xf32>
    %27 = vector.broadcast %26 : f32 to vector<1x1xf32>
    %cst_10 = arith.constant 0xFF800000 : f32
    %28 = vector.broadcast %cst_10 : f32 to vector<8x384xf32>
    %29 = arith.select %20, %12, %28 : vector<8x384xi1>, vector<8x384xf32>
    %30 = vector.shape_cast %29 : vector<8x384xf32> to vector<1x8x384xf32>
    %cst_11 = arith.constant dense<0xFF800000> : vector<1xf32>
    %31 = vector.multi_reduction <maximumf>, %30, %cst_11 [1, 2] : vector<1x8x384xf32> to vector<1xf32>
    %32 = vector.shape_cast %31 : vector<1xf32> to vector<1x1x1xf32>
    %33 = vector.extract %32[0, 0, 0] : f32 from vector<1x1x1xf32>
    %34 = vector.broadcast %33 : f32 to vector<1x1xf32>
    %35 = vector.broadcast %27 : vector<1x1xf32> to vector<8x384xf32>
    %36 = arith.subf %12, %35 : vector<8x384xf32>
    %37 = arith.subf %34, %27 : vector<1x1xf32>
    %38 = tpu.reciprocal %37 {approx = true} : vector<1x1xf32> -> vector<1x1xf32>
    %39 = vector.broadcast %38 : vector<1x1xf32> to vector<8x384xf32>
    %40 = arith.mulf %36, %39 : vector<8x384xf32>
    %c0_12 = arith.constant 0 : index
    %c0_13 = arith.constant 0 : index
    %41 = vector.load %arg4[%c0_12, %c0_13] : memref<8x384xf32, #tpu.memory_space<vmem>>, vector<8x384xf32>
    tpu.vector_store %arg4[%c0_12, %c0_13], %40 {strides = array<i32>} : memref<8x384xf32, #tpu.memory_space<vmem>>, vector<8x384xf32>,
    return
  }
}

module attributes {stable_mosaic.version = 11 : i64} {
  func.func @kernel(%arg0: memref<160x512xf32, #tpu.memory_space<vmem>>, %arg1: memref<16x160xf32, #tpu.memory_space<vmem>>, %arg2: memref<256x128xf32, #tpu.memory_space<vmem>>, %arg3: memref<1x128xf32, #tpu.memory_space<vmem>>, %arg4: memref<128x128xf32, #tpu.memory_space<vmem>>, %arg5: memref<1x128xf32, #tpu.memory_space<vmem>>, %arg6: memref<128x128xf32, #tpu.memory_space<vmem>>, %arg7: memref<1x128xf32, #tpu.memory_space<vmem>>, %arg8: memref<16x512xf32, #tpu.memory_space<vmem>>, %arg9: memref<16x128xf32, #tpu.memory_space<vmem>>, %arg10: memref<16x128xf32, #tpu.memory_space<vmem>>, %arg11: memref<2x256xf32, #tpu.memory_space<vmem>>, %arg12: memref<2x128xf32, #tpu.memory_space<vmem>>, %arg13: memref<2x128xf32, #tpu.memory_space<vmem>>, %arg14: memref<2x128xf32, #tpu.memory_space<vmem>>, %arg15: memref<2x128xf32, #tpu.memory_space<vmem>>, %arg16: memref<2x128xf32, #tpu.memory_space<vmem>>) attributes {dimension_semantics = [], scalar_prefetch = 0 : i64, scratch_operands = 0 : i64, tpu.core_type = #tpu.core_type<tc>} {
    %c0 = arith.constant 0 : index
    %c0_0 = arith.constant 0 : index
    %0 = vector.load %arg1[%c0, %c0_0] : memref<16x160xf32, #tpu.memory_space<vmem>>, vector<16x160xf32>
    %c0_1 = arith.constant 0 : index
    %c0_2 = arith.constant 0 : index
    %1 = vector.load %arg0[%c0_1, %c0_2] : memref<160x512xf32, #tpu.memory_space<vmem>>, vector<160x512xf32>
    %cst = arith.constant dense<0.000000e+00> : vector<16x512xf32>
    %2 = tpu.matmul %0, %1, %cst {dimension_numbers = #tpu.dot_dimension_numbers<[1], [0], [0], [1], [0, 0, 1, 1], [], []>} : vector<16x160xf32>, vector<160x512xf32>, vector<16x512xf32> -> vector<16x512xf32>
    %c0_3 = arith.constant 0 : index
    %c0_4 = arith.constant 0 : index
    %3 = vector.load %arg8[%c0_3, %c0_4] : memref<16x512xf32, #tpu.memory_space<vmem>>, vector<16x512xf32>
    tpu.vector_store %arg8[%c0_3, %c0_4], %2 {strides = array<i32>} : memref<16x512xf32, #tpu.memory_space<vmem>>, vector<16x512xf32>,
    %cst_5 = arith.constant 0.000000e+00 : f32
    %4 = vector.broadcast %cst_5 : f32 to vector<16x512xf32>
    %5 = arith.maximumf %2, %4 : vector<16x512xf32>
    %6 = vector.extract_strided_slice %5 {offsets = [0, 0], sizes = [16, 128], strides = [1, 1]} : vector<16x512xf32> to vector<16x128xf32>
    %7 = vector.extract_strided_slice %5 {offsets = [0, 128], sizes = [16, 128], strides = [1, 1]} : vector<16x512xf32> to vector<16x128xf32>
    %8 = arith.maximumf %6, %7 : vector<16x128xf32>
    %9 = vector.extract_strided_slice %5 {offsets = [0, 256], sizes = [16, 128], strides = [1, 1]} : vector<16x512xf32> to vector<16x128xf32>
    %10 = vector.extract_strided_slice %5 {offsets = [0, 384], sizes = [16, 128], strides = [1, 1]} : vector<16x512xf32> to vector<16x128xf32>
    %11 = arith.maximumf %9, %10 : vector<16x128xf32>
    %12 = arith.maximumf %8, %11 : vector<16x128xf32>
    %c0_6 = arith.constant 0 : index
    %c0_7 = arith.constant 0 : index
    %13 = vector.load %arg9[%c0_6, %c0_7] : memref<16x128xf32, #tpu.memory_space<vmem>>, vector<16x128xf32>
    tpu.vector_store %arg9[%c0_6, %c0_7], %12 {strides = array<i32>} : memref<16x128xf32, #tpu.memory_space<vmem>>, vector<16x128xf32>,
    %14 = tpu.iota {dimensions = array<i32: 0>} : vector<16x128xi32>
    %15 = tpu.iota {dimensions = array<i32: 1>} : vector<16x128xi32>
    %c16_i32 = arith.constant 16 : i32
    %16 = vector.broadcast %c16_i32 : i32 to vector<16x128xi32>
    %17 = arith.cmpi slt, %14, %16 : vector<16x128xi32>
    %c32_i32 = arith.constant 32 : i32
    %18 = vector.broadcast %c32_i32 : i32 to vector<16x128xi32>
    %19 = arith.cmpi slt, %15, %18 : vector<16x128xi32>
    %20 = arith.andi %17, %19 : vector<16x128xi1>
    %cst_8 = arith.constant 0x7F800000 : f32
    %21 = vector.broadcast %cst_8 : f32 to vector<16x128xf32>
    %22 = arith.select %20, %12, %21 : vector<16x128xi1>, vector<16x128xf32>
    %23 = vector.shape_cast %22 : vector<16x128xf32> to vector<1x16x128xf32>
    %cst_9 = arith.constant dense<0x7F800000> : vector<1xf32>
    %24 = vector.multi_reduction <minimumf>, %23, %cst_9 [1, 2] : vector<1x16x128xf32> to vector<1xf32>
    %25 = vector.shape_cast %24 : vector<1xf32> to vector<1x1x1xf32>
    %26 = vector.extract %25[0, 0, 0] : f32 from vector<1x1x1xf32>
    %27 = vector.broadcast %26 : f32 to vector<1x1xf32>
    %cst_10 = arith.constant 0xFF800000 : f32
    %28 = vector.broadcast %cst_10 : f32 to vector<16x128xf32>
    %29 = arith.select %20, %12, %28 : vector<16x128xi1>, vector<16x128xf32>
    %30 = vector.shape_cast %29 : vector<16x128xf32> to vector<1x16x128xf32>
    %cst_11 = arith.constant dense<0xFF800000> : vector<1xf32>
    %31 = vector.multi_reduction <maximumf>, %30, %cst_11 [1, 2] : vector<1x16x128xf32> to vector<1xf32>
    %32 = vector.shape_cast %31 : vector<1xf32> to vector<1x1x1xf32>
    %33 = vector.extract %32[0, 0, 0] : f32 from vector<1x1x1xf32>
    %34 = vector.broadcast %33 : f32 to vector<1x1xf32>
    %35 = vector.broadcast %27 : vector<1x1xf32> to vector<16x128xf32>
    %36 = arith.subf %12, %35 : vector<16x128xf32>
    %37 = arith.subf %34, %27 : vector<1x1xf32>
    %38 = tpu.reciprocal %37 {approx = true} : vector<1x1xf32> -> vector<1x1xf32>
    %39 = vector.broadcast %38 : vector<1x1xf32> to vector<16x128xf32>
    %40 = arith.mulf %36, %39 : vector<16x128xf32>
    %c0_12 = arith.constant 0 : index
    %c0_13 = arith.constant 0 : index
    %41 = vector.load %arg10[%c0_12, %c0_13] : memref<16x128xf32, #tpu.memory_space<vmem>>, vector<16x128xf32>
    tpu.vector_store %arg10[%c0_12, %c0_13], %40 {strides = array<i32>} : memref<16x128xf32, #tpu.memory_space<vmem>>, vector<16x128xf32>,
    %42 = vector.extract_strided_slice %40 {offsets = [0, 0], sizes = [1, 16], strides = [1, 1]} : vector<16x128xf32> to vector<1x16xf32>
    %43 = vector.shape_cast %42 : vector<1x16xf32> to vector<16xf32>
    %c0_14 = arith.constant 0 : index
    %c0_15 = arith.constant 0 : index
    %44 = vector.load %arg11[%c0_14, %c0_15] : memref<2x256xf32, #tpu.memory_space<vmem>>, vector<1x16xf32>
    %45 = vector.shape_cast %44 : vector<1x16xf32> to vector<16xf32>
    %46 = vector.shape_cast %43 : vector<16xf32> to vector<1x16xf32>
    tpu.vector_store %arg11[%c0_14, %c0_15], %46 {strides = array<i32>} : memref<2x256xf32, #tpu.memory_space<vmem>>, vector<1x16xf32>,
    %47 = vector.extract_strided_slice %40 {offsets = [1, 0], sizes = [1, 16], strides = [1, 1]} : vector<16x128xf32> to vector<1x16xf32>
    %48 = vector.shape_cast %47 : vector<1x16xf32> to vector<16xf32>
    %c0_16 = arith.constant 0 : index
    %c16 = arith.constant 16 : index
    %49 = vector.load %arg11[%c0_16, %c16] : memref<2x256xf32, #tpu.memory_space<vmem>>, vector<1x16xf32>
    %50 = vector.shape_cast %49 : vector<1x16xf32> to vector<16xf32>
    %51 = vector.shape_cast %48 : vector<16xf32> to vector<1x16xf32>
    tpu.vector_store %arg11[%c0_16, %c16], %51 {strides = array<i32>} : memref<2x256xf32, #tpu.memory_space<vmem>>, vector<1x16xf32>,
    %52 = vector.extract_strided_slice %40 {offsets = [2, 0], sizes = [1, 16], strides = [1, 1]} : vector<16x128xf32> to vector<1x16xf32>
    %53 = vector.shape_cast %52 : vector<1x16xf32> to vector<16xf32>
    %c0_17 = arith.constant 0 : index
    %c32 = arith.constant 32 : index
    %54 = vector.load %arg11[%c0_17, %c32] : memref<2x256xf32, #tpu.memory_space<vmem>>, vector<1x16xf32>
    %55 = vector.shape_cast %54 : vector<1x16xf32> to vector<16xf32>
    %56 = vector.shape_cast %53 : vector<16xf32> to vector<1x16xf32>
    tpu.vector_store %arg11[%c0_17, %c32], %56 {strides = array<i32>} : memref<2x256xf32, #tpu.memory_space<vmem>>, vector<1x16xf32>,
    %57 = vector.extract_strided_slice %40 {offsets = [3, 0], sizes = [1, 16], strides = [1, 1]} : vector<16x128xf32> to vector<1x16xf32>
    %58 = vector.shape_cast %57 : vector<1x16xf32> to vector<16xf32>
    %c0_18 = arith.constant 0 : index
    %c48 = arith.constant 48 : index
    %59 = vector.load %arg11[%c0_18, %c48] : memref<2x256xf32, #tpu.memory_space<vmem>>, vector<1x16xf32>
    %60 = vector.shape_cast %59 : vector<1x16xf32> to vector<16xf32>
    %61 = vector.shape_cast %58 : vector<16xf32> to vector<1x16xf32>
    tpu.vector_store %arg11[%c0_18, %c48], %61 {strides = array<i32>} : memref<2x256xf32, #tpu.memory_space<vmem>>, vector<1x16xf32>,
    %62 = vector.extract_strided_slice %40 {offsets = [4, 0], sizes = [1, 16], strides = [1, 1]} : vector<16x128xf32> to vector<1x16xf32>
    %63 = vector.shape_cast %62 : vector<1x16xf32> to vector<16xf32>
    %c0_19 = arith.constant 0 : index
    %c64 = arith.constant 64 : index
    %64 = vector.load %arg11[%c0_19, %c64] : memref<2x256xf32, #tpu.memory_space<vmem>>, vector<1x16xf32>
    %65 = vector.shape_cast %64 : vector<1x16xf32> to vector<16xf32>
    %66 = vector.shape_cast %63 : vector<16xf32> to vector<1x16xf32>
    tpu.vector_store %arg11[%c0_19, %c64], %66 {strides = array<i32>} : memref<2x256xf32, #tpu.memory_space<vmem>>, vector<1x16xf32>,
    %67 = vector.extract_strided_slice %40 {offsets = [5, 0], sizes = [1, 16], strides = [1, 1]} : vector<16x128xf32> to vector<1x16xf32>
    %68 = vector.shape_cast %67 : vector<1x16xf32> to vector<16xf32>
    %c0_20 = arith.constant 0 : index
    %c80 = arith.constant 80 : index
    %69 = vector.load %arg11[%c0_20, %c80] : memref<2x256xf32, #tpu.memory_space<vmem>>, vector<1x16xf32>
    %70 = vector.shape_cast %69 : vector<1x16xf32> to vector<16xf32>
    %71 = vector.shape_cast %68 : vector<16xf32> to vector<1x16xf32>
    tpu.vector_store %arg11[%c0_20, %c80], %71 {strides = array<i32>} : memref<2x256xf32, #tpu.memory_space<vmem>>, vector<1x16xf32>,
    %72 = vector.extract_strided_slice %40 {offsets = [6, 0], sizes = [1, 16], strides = [1, 1]} : vector<16x128xf32> to vector<1x16xf32>
    %73 = vector.shape_cast %72 : vector<1x16xf32> to vector<16xf32>
    %c0_21 = arith.constant 0 : index
    %c96 = arith.constant 96 : index
    %74 = vector.load %arg11[%c0_21, %c96] : memref<2x256xf32, #tpu.memory_space<vmem>>, vector<1x16xf32>
    %75 = vector.shape_cast %74 : vector<1x16xf32> to vector<16xf32>
    %76 = vector.shape_cast %73 : vector<16xf32> to vector<1x16xf32>
    tpu.vector_store %arg11[%c0_21, %c96], %76 {strides = array<i32>} : memref<2x256xf32, #tpu.memory_space<vmem>>, vector<1x16xf32>,
    %77 = vector.extract_strided_slice %40 {offsets = [7, 0], sizes = [1, 16], strides = [1, 1]} : vector<16x128xf32> to vector<1x16xf32>
    %78 = vector.shape_cast %77 : vector<1x16xf32> to vector<16xf32>
    %c0_22 = arith.constant 0 : index
    %c112 = arith.constant 112 : index
    %79 = vector.load %arg11[%c0_22, %c112] : memref<2x256xf32, #tpu.memory_space<vmem>>, vector<1x16xf32>
    %80 = vector.shape_cast %79 : vector<1x16xf32> to vector<16xf32>
    %81 = vector.shape_cast %78 : vector<16xf32> to vector<1x16xf32>
    tpu.vector_store %arg11[%c0_22, %c112], %81 {strides = array<i32>} : memref<2x256xf32, #tpu.memory_space<vmem>>, vector<1x16xf32>,
    %82 = vector.extract_strided_slice %40 {offsets = [8, 0], sizes = [1, 16], strides = [1, 1]} : vector<16x128xf32> to vector<1x16xf32>
    %83 = vector.shape_cast %82 : vector<1x16xf32> to vector<16xf32>
    %c0_23 = arith.constant 0 : index
    %c128 = arith.constant 128 : index
    %84 = vector.load %arg11[%c0_23, %c128] : memref<2x256xf32, #tpu.memory_space<vmem>>, vector<1x16xf32>
    %85 = vector.shape_cast %84 : vector<1x16xf32> to vector<16xf32>
    %86 = vector.shape_cast %83 : vector<16xf32> to vector<1x16xf32>
    tpu.vector_store %arg11[%c0_23, %c128], %86 {strides = array<i32>} : memref<2x256xf32, #tpu.memory_space<vmem>>, vector<1x16xf32>,
    %87 = vector.extract_strided_slice %40 {offsets = [9, 0], sizes = [1, 16], strides = [1, 1]} : vector<16x128xf32> to vector<1x16xf32>
    %88 = vector.shape_cast %87 : vector<1x16xf32> to vector<16xf32>
    %c0_24 = arith.constant 0 : index
    %c144 = arith.constant 144 : index
    %89 = vector.load %arg11[%c0_24, %c144] : memref<2x256xf32, #tpu.memory_space<vmem>>, vector<1x16xf32>
    %90 = vector.shape_cast %89 : vector<1x16xf32> to vector<16xf32>
    %91 = vector.shape_cast %88 : vector<16xf32> to vector<1x16xf32>
    tpu.vector_store %arg11[%c0_24, %c144], %91 {strides = array<i32>} : memref<2x256xf32, #tpu.memory_space<vmem>>, vector<1x16xf32>,
    %92 = vector.extract_strided_slice %40 {offsets = [10, 0], sizes = [1, 16], strides = [1, 1]} : vector<16x128xf32> to vector<1x16xf32>
    %93 = vector.shape_cast %92 : vector<1x16xf32> to vector<16xf32>
    %c0_25 = arith.constant 0 : index
    %c160 = arith.constant 160 : index
    %94 = vector.load %arg11[%c0_25, %c160] : memref<2x256xf32, #tpu.memory_space<vmem>>, vector<1x16xf32>
    %95 = vector.shape_cast %94 : vector<1x16xf32> to vector<16xf32>
    %96 = vector.shape_cast %93 : vector<16xf32> to vector<1x16xf32>
    tpu.vector_store %arg11[%c0_25, %c160], %96 {strides = array<i32>} : memref<2x256xf32, #tpu.memory_space<vmem>>, vector<1x16xf32>,
    %97 = vector.extract_strided_slice %40 {offsets = [11, 0], sizes = [1, 16], strides = [1, 1]} : vector<16x128xf32> to vector<1x16xf32>
    %98 = vector.shape_cast %97 : vector<1x16xf32> to vector<16xf32>
    %c0_26 = arith.constant 0 : index
    %c176 = arith.constant 176 : index
    %99 = vector.load %arg11[%c0_26, %c176] : memref<2x256xf32, #tpu.memory_space<vmem>>, vector<1x16xf32>
    %100 = vector.shape_cast %99 : vector<1x16xf32> to vector<16xf32>
    %101 = vector.shape_cast %98 : vector<16xf32> to vector<1x16xf32>
    tpu.vector_store %arg11[%c0_26, %c176], %101 {strides = array<i32>} : memref<2x256xf32, #tpu.memory_space<vmem>>, vector<1x16xf32>,
    %102 = vector.extract_strided_slice %40 {offsets = [12, 0], sizes = [1, 16], strides = [1, 1]} : vector<16x128xf32> to vector<1x16xf32>
    %103 = vector.shape_cast %102 : vector<1x16xf32> to vector<16xf32>
    %c0_27 = arith.constant 0 : index
    %c192 = arith.constant 192 : index
    %104 = vector.load %arg11[%c0_27, %c192] : memref<2x256xf32, #tpu.memory_space<vmem>>, vector<1x16xf32>
    %105 = vector.shape_cast %104 : vector<1x16xf32> to vector<16xf32>
    %106 = vector.shape_cast %103 : vector<16xf32> to vector<1x16xf32>
    tpu.vector_store %arg11[%c0_27, %c192], %106 {strides = array<i32>} : memref<2x256xf32, #tpu.memory_space<vmem>>, vector<1x16xf32>,
    %107 = vector.extract_strided_slice %40 {offsets = [13, 0], sizes = [1, 16], strides = [1, 1]} : vector<16x128xf32> to vector<1x16xf32>
    %108 = vector.shape_cast %107 : vector<1x16xf32> to vector<16xf32>
    %c0_28 = arith.constant 0 : index
    %c208 = arith.constant 208 : index
    %109 = vector.load %arg11[%c0_28, %c208] : memref<2x256xf32, #tpu.memory_space<vmem>>, vector<1x16xf32>
    %110 = vector.shape_cast %109 : vector<1x16xf32> to vector<16xf32>
    %111 = vector.shape_cast %108 : vector<16xf32> to vector<1x16xf32>
    tpu.vector_store %arg11[%c0_28, %c208], %111 {strides = array<i32>} : memref<2x256xf32, #tpu.memory_space<vmem>>, vector<1x16xf32>,
    %112 = vector.extract_strided_slice %40 {offsets = [14, 0], sizes = [1, 16], strides = [1, 1]} : vector<16x128xf32> to vector<1x16xf32>
    %113 = vector.shape_cast %112 : vector<1x16xf32> to vector<16xf32>
    %c0_29 = arith.constant 0 : index
    %c224 = arith.constant 224 : index
    %114 = vector.load %arg11[%c0_29, %c224] : memref<2x256xf32, #tpu.memory_space<vmem>>, vector<1x16xf32>
    %115 = vector.shape_cast %114 : vector<1x16xf32> to vector<16xf32>
    %116 = vector.shape_cast %113 : vector<16xf32> to vector<1x16xf32>
    tpu.vector_store %arg11[%c0_29, %c224], %116 {strides = array<i32>} : memref<2x256xf32, #tpu.memory_space<vmem>>, vector<1x16xf32>,
    %117 = vector.extract_strided_slice %40 {offsets = [15, 0], sizes = [1, 16], strides = [1, 1]} : vector<16x128xf32> to vector<1x16xf32>
    %118 = vector.shape_cast %117 : vector<1x16xf32> to vector<16xf32>
    %c0_30 = arith.constant 0 : index
    %c240 = arith.constant 240 : index
    %119 = vector.load %arg11[%c0_30, %c240] : memref<2x256xf32, #tpu.memory_space<vmem>>, vector<1x16xf32>
    %120 = vector.shape_cast %119 : vector<1x16xf32> to vector<16xf32>
    %121 = vector.shape_cast %118 : vector<16xf32> to vector<1x16xf32>
    tpu.vector_store %arg11[%c0_30, %c240], %121 {strides = array<i32>} : memref<2x256xf32, #tpu.memory_space<vmem>>, vector<1x16xf32>,
    %122 = vector.extract_strided_slice %40 {offsets = [0, 16], sizes = [1, 16], strides = [1, 1]} : vector<16x128xf32> to vector<1x16xf32>
    %123 = vector.shape_cast %122 : vector<1x16xf32> to vector<16xf32>
    %c1 = arith.constant 1 : index
    %c0_31 = arith.constant 0 : index
    %124 = vector.load %arg11[%c1, %c0_31] : memref<2x256xf32, #tpu.memory_space<vmem>>, vector<1x16xf32>
    %125 = vector.shape_cast %124 : vector<1x16xf32> to vector<16xf32>
    %126 = vector.shape_cast %123 : vector<16xf32> to vector<1x16xf32>
    tpu.vector_store %arg11[%c1, %c0_31], %126 {strides = array<i32>} : memref<2x256xf32, #tpu.memory_space<vmem>>, vector<1x16xf32>,
    %127 = vector.extract_strided_slice %40 {offsets = [1, 16], sizes = [1, 16], strides = [1, 1]} : vector<16x128xf32> to vector<1x16xf32>
    %128 = vector.shape_cast %127 : vector<1x16xf32> to vector<16xf32>
    %c1_32 = arith.constant 1 : index
    %c16_33 = arith.constant 16 : index
    %129 = vector.load %arg11[%c1_32, %c16_33] : memref<2x256xf32, #tpu.memory_space<vmem>>, vector<1x16xf32>
    %130 = vector.shape_cast %129 : vector<1x16xf32> to vector<16xf32>
    %131 = vector.shape_cast %128 : vector<16xf32> to vector<1x16xf32>
    tpu.vector_store %arg11[%c1_32, %c16_33], %131 {strides = array<i32>} : memref<2x256xf32, #tpu.memory_space<vmem>>, vector<1x16xf32>,
    %132 = vector.extract_strided_slice %40 {offsets = [2, 16], sizes = [1, 16], strides = [1, 1]} : vector<16x128xf32> to vector<1x16xf32>
    %133 = vector.shape_cast %132 : vector<1x16xf32> to vector<16xf32>
    %c1_34 = arith.constant 1 : index
    %c32_35 = arith.constant 32 : index
    %134 = vector.load %arg11[%c1_34, %c32_35] : memref<2x256xf32, #tpu.memory_space<vmem>>, vector<1x16xf32>
    %135 = vector.shape_cast %134 : vector<1x16xf32> to vector<16xf32>
    %136 = vector.shape_cast %133 : vector<16xf32> to vector<1x16xf32>
    tpu.vector_store %arg11[%c1_34, %c32_35], %136 {strides = array<i32>} : memref<2x256xf32, #tpu.memory_space<vmem>>, vector<1x16xf32>,
    %137 = vector.extract_strided_slice %40 {offsets = [3, 16], sizes = [1, 16], strides = [1, 1]} : vector<16x128xf32> to vector<1x16xf32>
    %138 = vector.shape_cast %137 : vector<1x16xf32> to vector<16xf32>
    %c1_36 = arith.constant 1 : index
    %c48_37 = arith.constant 48 : index
    %139 = vector.load %arg11[%c1_36, %c48_37] : memref<2x256xf32, #tpu.memory_space<vmem>>, vector<1x16xf32>
    %140 = vector.shape_cast %139 : vector<1x16xf32> to vector<16xf32>
    %141 = vector.shape_cast %138 : vector<16xf32> to vector<1x16xf32>
    tpu.vector_store %arg11[%c1_36, %c48_37], %141 {strides = array<i32>} : memref<2x256xf32, #tpu.memory_space<vmem>>, vector<1x16xf32>,
    %142 = vector.extract_strided_slice %40 {offsets = [4, 16], sizes = [1, 16], strides = [1, 1]} : vector<16x128xf32> to vector<1x16xf32>
    %143 = vector.shape_cast %142 : vector<1x16xf32> to vector<16xf32>
    %c1_38 = arith.constant 1 : index
    %c64_39 = arith.constant 64 : index
    %144 = vector.load %arg11[%c1_38, %c64_39] : memref<2x256xf32, #tpu.memory_space<vmem>>, vector<1x16xf32>
    %145 = vector.shape_cast %144 : vector<1x16xf32> to vector<16xf32>
    %146 = vector.shape_cast %143 : vector<16xf32> to vector<1x16xf32>
    tpu.vector_store %arg11[%c1_38, %c64_39], %146 {strides = array<i32>} : memref<2x256xf32, #tpu.memory_space<vmem>>, vector<1x16xf32>,
    %147 = vector.extract_strided_slice %40 {offsets = [5, 16], sizes = [1, 16], strides = [1, 1]} : vector<16x128xf32> to vector<1x16xf32>
    %148 = vector.shape_cast %147 : vector<1x16xf32> to vector<16xf32>
    %c1_40 = arith.constant 1 : index
    %c80_41 = arith.constant 80 : index
    %149 = vector.load %arg11[%c1_40, %c80_41] : memref<2x256xf32, #tpu.memory_space<vmem>>, vector<1x16xf32>
    %150 = vector.shape_cast %149 : vector<1x16xf32> to vector<16xf32>
    %151 = vector.shape_cast %148 : vector<16xf32> to vector<1x16xf32>
    tpu.vector_store %arg11[%c1_40, %c80_41], %151 {strides = array<i32>} : memref<2x256xf32, #tpu.memory_space<vmem>>, vector<1x16xf32>,
    %152 = vector.extract_strided_slice %40 {offsets = [6, 16], sizes = [1, 16], strides = [1, 1]} : vector<16x128xf32> to vector<1x16xf32>
    %153 = vector.shape_cast %152 : vector<1x16xf32> to vector<16xf32>
    %c1_42 = arith.constant 1 : index
    %c96_43 = arith.constant 96 : index
    %154 = vector.load %arg11[%c1_42, %c96_43] : memref<2x256xf32, #tpu.memory_space<vmem>>, vector<1x16xf32>
    %155 = vector.shape_cast %154 : vector<1x16xf32> to vector<16xf32>
    %156 = vector.shape_cast %153 : vector<16xf32> to vector<1x16xf32>
    tpu.vector_store %arg11[%c1_42, %c96_43], %156 {strides = array<i32>} : memref<2x256xf32, #tpu.memory_space<vmem>>, vector<1x16xf32>,
    %157 = vector.extract_strided_slice %40 {offsets = [7, 16], sizes = [1, 16], strides = [1, 1]} : vector<16x128xf32> to vector<1x16xf32>
    %158 = vector.shape_cast %157 : vector<1x16xf32> to vector<16xf32>
    %c1_44 = arith.constant 1 : index
    %c112_45 = arith.constant 112 : index
    %159 = vector.load %arg11[%c1_44, %c112_45] : memref<2x256xf32, #tpu.memory_space<vmem>>, vector<1x16xf32>
    %160 = vector.shape_cast %159 : vector<1x16xf32> to vector<16xf32>
    %161 = vector.shape_cast %158 : vector<16xf32> to vector<1x16xf32>
    tpu.vector_store %arg11[%c1_44, %c112_45], %161 {strides = array<i32>} : memref<2x256xf32, #tpu.memory_space<vmem>>, vector<1x16xf32>,
    %162 = vector.extract_strided_slice %40 {offsets = [8, 16], sizes = [1, 16], strides = [1, 1]} : vector<16x128xf32> to vector<1x16xf32>
    %163 = vector.shape_cast %162 : vector<1x16xf32> to vector<16xf32>
    %c1_46 = arith.constant 1 : index
    %c128_47 = arith.constant 128 : index
    %164 = vector.load %arg11[%c1_46, %c128_47] : memref<2x256xf32, #tpu.memory_space<vmem>>, vector<1x16xf32>
    %165 = vector.shape_cast %164 : vector<1x16xf32> to vector<16xf32>
    %166 = vector.shape_cast %163 : vector<16xf32> to vector<1x16xf32>
    tpu.vector_store %arg11[%c1_46, %c128_47], %166 {strides = array<i32>} : memref<2x256xf32, #tpu.memory_space<vmem>>, vector<1x16xf32>,
    %167 = vector.extract_strided_slice %40 {offsets = [9, 16], sizes = [1, 16], strides = [1, 1]} : vector<16x128xf32> to vector<1x16xf32>
    %168 = vector.shape_cast %167 : vector<1x16xf32> to vector<16xf32>
    %c1_48 = arith.constant 1 : index
    %c144_49 = arith.constant 144 : index
    %169 = vector.load %arg11[%c1_48, %c144_49] : memref<2x256xf32, #tpu.memory_space<vmem>>, vector<1x16xf32>
    %170 = vector.shape_cast %169 : vector<1x16xf32> to vector<16xf32>
    %171 = vector.shape_cast %168 : vector<16xf32> to vector<1x16xf32>
    tpu.vector_store %arg11[%c1_48, %c144_49], %171 {strides = array<i32>} : memref<2x256xf32, #tpu.memory_space<vmem>>, vector<1x16xf32>,
    %172 = vector.extract_strided_slice %40 {offsets = [10, 16], sizes = [1, 16], strides = [1, 1]} : vector<16x128xf32> to vector<1x16xf32>
    %173 = vector.shape_cast %172 : vector<1x16xf32> to vector<16xf32>
    %c1_50 = arith.constant 1 : index
    %c160_51 = arith.constant 160 : index
    %174 = vector.load %arg11[%c1_50, %c160_51] : memref<2x256xf32, #tpu.memory_space<vmem>>, vector<1x16xf32>
    %175 = vector.shape_cast %174 : vector<1x16xf32> to vector<16xf32>
    %176 = vector.shape_cast %173 : vector<16xf32> to vector<1x16xf32>
    tpu.vector_store %arg11[%c1_50, %c160_51], %176 {strides = array<i32>} : memref<2x256xf32, #tpu.memory_space<vmem>>, vector<1x16xf32>,
    %177 = vector.extract_strided_slice %40 {offsets = [11, 16], sizes = [1, 16], strides = [1, 1]} : vector<16x128xf32> to vector<1x16xf32>
    %178 = vector.shape_cast %177 : vector<1x16xf32> to vector<16xf32>
    %c1_52 = arith.constant 1 : index
    %c176_53 = arith.constant 176 : index
    %179 = vector.load %arg11[%c1_52, %c176_53] : memref<2x256xf32, #tpu.memory_space<vmem>>, vector<1x16xf32>
    %180 = vector.shape_cast %179 : vector<1x16xf32> to vector<16xf32>
    %181 = vector.shape_cast %178 : vector<16xf32> to vector<1x16xf32>
    tpu.vector_store %arg11[%c1_52, %c176_53], %181 {strides = array<i32>} : memref<2x256xf32, #tpu.memory_space<vmem>>, vector<1x16xf32>,
    %182 = vector.extract_strided_slice %40 {offsets = [12, 16], sizes = [1, 16], strides = [1, 1]} : vector<16x128xf32> to vector<1x16xf32>
    %183 = vector.shape_cast %182 : vector<1x16xf32> to vector<16xf32>
    %c1_54 = arith.constant 1 : index
    %c192_55 = arith.constant 192 : index
    %184 = vector.load %arg11[%c1_54, %c192_55] : memref<2x256xf32, #tpu.memory_space<vmem>>, vector<1x16xf32>
    %185 = vector.shape_cast %184 : vector<1x16xf32> to vector<16xf32>
    %186 = vector.shape_cast %183 : vector<16xf32> to vector<1x16xf32>
    tpu.vector_store %arg11[%c1_54, %c192_55], %186 {strides = array<i32>} : memref<2x256xf32, #tpu.memory_space<vmem>>, vector<1x16xf32>,
    %187 = vector.extract_strided_slice %40 {offsets = [13, 16], sizes = [1, 16], strides = [1, 1]} : vector<16x128xf32> to vector<1x16xf32>
    %188 = vector.shape_cast %187 : vector<1x16xf32> to vector<16xf32>
    %c1_56 = arith.constant 1 : index
    %c208_57 = arith.constant 208 : index
    %189 = vector.load %arg11[%c1_56, %c208_57] : memref<2x256xf32, #tpu.memory_space<vmem>>, vector<1x16xf32>
    %190 = vector.shape_cast %189 : vector<1x16xf32> to vector<16xf32>
    %191 = vector.shape_cast %188 : vector<16xf32> to vector<1x16xf32>
    tpu.vector_store %arg11[%c1_56, %c208_57], %191 {strides = array<i32>} : memref<2x256xf32, #tpu.memory_space<vmem>>, vector<1x16xf32>,
    %192 = vector.extract_strided_slice %40 {offsets = [14, 16], sizes = [1, 16], strides = [1, 1]} : vector<16x128xf32> to vector<1x16xf32>
    %193 = vector.shape_cast %192 : vector<1x16xf32> to vector<16xf32>
    %c1_58 = arith.constant 1 : index
    %c224_59 = arith.constant 224 : index
    %194 = vector.load %arg11[%c1_58, %c224_59] : memref<2x256xf32, #tpu.memory_space<vmem>>, vector<1x16xf32>
    %195 = vector.shape_cast %194 : vector<1x16xf32> to vector<16xf32>
    %196 = vector.shape_cast %193 : vector<16xf32> to vector<1x16xf32>
    tpu.vector_store %arg11[%c1_58, %c224_59], %196 {strides = array<i32>} : memref<2x256xf32, #tpu.memory_space<vmem>>, vector<1x16xf32>,
    %197 = vector.extract_strided_slice %40 {offsets = [15, 16], sizes = [1, 16], strides = [1, 1]} : vector<16x128xf32> to vector<1x16xf32>
    %198 = vector.shape_cast %197 : vector<1x16xf32> to vector<16xf32>
    %c1_60 = arith.constant 1 : index
    %c240_61 = arith.constant 240 : index
    %199 = vector.load %arg11[%c1_60, %c240_61] : memref<2x256xf32, #tpu.memory_space<vmem>>, vector<1x16xf32>
    %200 = vector.shape_cast %199 : vector<1x16xf32> to vector<16xf32>
    %201 = vector.shape_cast %198 : vector<16xf32> to vector<1x16xf32>
    tpu.vector_store %arg11[%c1_60, %c240_61], %201 {strides = array<i32>} : memref<2x256xf32, #tpu.memory_space<vmem>>, vector<1x16xf32>,
    %c0_62 = arith.constant 0 : index
    %c0_63 = arith.constant 0 : index
    %202 = vector.load %arg11[%c0_62, %c0_63] : memref<2x256xf32, #tpu.memory_space<vmem>>, vector<2x256xf32>
    %c0_64 = arith.constant 0 : index
    %c0_65 = arith.constant 0 : index
    %203 = vector.load %arg2[%c0_64, %c0_65] : memref<256x128xf32, #tpu.memory_space<vmem>>, vector<256x128xf32>
    %cst_66 = arith.constant dense<0.000000e+00> : vector<2x128xf32>
    %204 = tpu.matmul %202, %203, %cst_66 {dimension_numbers = #tpu.dot_dimension_numbers<[1], [0], [0], [1], [0, 0, 1, 1], [], []>} : vector<2x256xf32>, vector<256x128xf32>, vector<2x128xf32> -> vector<2x128xf32>
    %c0_67 = arith.constant 0 : index
    %c0_68 = arith.constant 0 : index
    %205 = vector.load %arg3[%c0_67, %c0_68] : memref<1x128xf32, #tpu.memory_space<vmem>>, vector<1x128xf32>
    %206 = vector.broadcast %205 : vector<1x128xf32> to vector<2x128xf32>
    %207 = arith.addf %204, %206 : vector<2x128xf32>
    %cst_69 = arith.constant 0.000000e+00 : f32
    %208 = vector.broadcast %cst_69 : f32 to vector<2x128xf32>
    %209 = arith.maximumf %207, %208 : vector<2x128xf32>
    %c0_70 = arith.constant 0 : index
    %c0_71 = arith.constant 0 : index
    %210 = vector.load %arg12[%c0_70, %c0_71] : memref<2x128xf32, #tpu.memory_space<vmem>>, vector<2x128xf32>
    tpu.vector_store %arg12[%c0_70, %c0_71], %209 {strides = array<i32>} : memref<2x128xf32, #tpu.memory_space<vmem>>, vector<2x128xf32>,
    %211 = tpu.iota {dimensions = array<i32: 1>} : vector<2x128xi32>
    %c120_i32 = arith.constant 120 : i32
    %212 = vector.broadcast %c120_i32 : i32 to vector<2x128xi32>
    %213 = arith.cmpi slt, %211, %212 : vector<2x128xi32>
    %cst_72 = arith.constant 0x7F800000 : f32
    %214 = vector.broadcast %cst_72 : f32 to vector<2x128xf32>
    %215 = arith.select %213, %209, %214 : vector<2x128xi1>, vector<2x128xf32>
    %216 = vector.shape_cast %215 : vector<2x128xf32> to vector<1x2x128xf32>
    %cst_73 = arith.constant dense<0x7F800000> : vector<1xf32>
    %217 = vector.multi_reduction <minimumf>, %216, %cst_73 [1, 2] : vector<1x2x128xf32> to vector<1xf32>
    %218 = vector.shape_cast %217 : vector<1xf32> to vector<1x1x1xf32>
    %219 = vector.extract %218[0, 0, 0] : f32 from vector<1x1x1xf32>
    %220 = vector.broadcast %219 : f32 to vector<1x1xf32>
    %c120_i32_74 = arith.constant 120 : i32
    %221 = vector.broadcast %c120_i32_74 : i32 to vector<2x128xi32>
    %222 = arith.cmpi slt, %211, %221 : vector<2x128xi32>
    %cst_75 = arith.constant 0xFF800000 : f32
    %223 = vector.broadcast %cst_75 : f32 to vector<2x128xf32>
    %224 = arith.select %222, %209, %223 : vector<2x128xi1>, vector<2x128xf32>
    %225 = vector.shape_cast %224 : vector<2x128xf32> to vector<1x2x128xf32>
    %cst_76 = arith.constant dense<0xFF800000> : vector<1xf32>
    %226 = vector.multi_reduction <maximumf>, %225, %cst_76 [1, 2] : vector<1x2x128xf32> to vector<1xf32>
    %227 = vector.shape_cast %226 : vector<1xf32> to vector<1x1x1xf32>
    %228 = vector.extract %227[0, 0, 0] : f32 from vector<1x1x1xf32>
    %229 = vector.broadcast %228 : f32 to vector<1x1xf32>
    %230 = vector.broadcast %220 : vector<1x1xf32> to vector<2x128xf32>
    %231 = arith.subf %209, %230 : vector<2x128xf32>
    %232 = arith.subf %229, %220 : vector<1x1xf32>
    %233 = tpu.reciprocal %232 {approx = true} : vector<1x1xf32> -> vector<1x1xf32>
    %234 = vector.broadcast %233 : vector<1x1xf32> to vector<2x128xf32>
    %235 = arith.mulf %231, %234 : vector<2x128xf32>
    %c0_77 = arith.constant 0 : index
    %c0_78 = arith.constant 0 : index
    %236 = vector.load %arg13[%c0_77, %c0_78] : memref<2x128xf32, #tpu.memory_space<vmem>>, vector<2x128xf32>
    tpu.vector_store %arg13[%c0_77, %c0_78], %235 {strides = array<i32>} : memref<2x128xf32, #tpu.memory_space<vmem>>, vector<2x128xf32>,
    %c0_79 = arith.constant 0 : index
    %c0_80 = arith.constant 0 : index
    %237 = vector.load %arg4[%c0_79, %c0_80] : memref<128x128xf32, #tpu.memory_space<vmem>>, vector<128x128xf32>
    %cst_81 = arith.constant dense<0.000000e+00> : vector<2x128xf32>
    %238 = tpu.matmul %235, %237, %cst_81 {dimension_numbers = #tpu.dot_dimension_numbers<[1], [0], [0], [1], [0, 0, 1, 1], [], []>} : vector<2x128xf32>, vector<128x128xf32>, vector<2x128xf32> -> vector<2x128xf32>
    %c0_82 = arith.constant 0 : index
    %c0_83 = arith.constant 0 : index
    %239 = vector.load %arg5[%c0_82, %c0_83] : memref<1x128xf32, #tpu.memory_space<vmem>>, vector<1x128xf32>
    %240 = vector.broadcast %239 : vector<1x128xf32> to vector<2x128xf32>
    %241 = arith.addf %238, %240 : vector<2x128xf32>
    %cst_84 = arith.constant 0.000000e+00 : f32
    %242 = vector.broadcast %cst_84 : f32 to vector<2x128xf32>
    %243 = arith.maximumf %241, %242 : vector<2x128xf32>
    %c0_85 = arith.constant 0 : index
    %c0_86 = arith.constant 0 : index
    %244 = vector.load %arg14[%c0_85, %c0_86] : memref<2x128xf32, #tpu.memory_space<vmem>>, vector<2x128xf32>
    tpu.vector_store %arg14[%c0_85, %c0_86], %243 {strides = array<i32>} : memref<2x128xf32, #tpu.memory_space<vmem>>, vector<2x128xf32>,
    %c84_i32 = arith.constant 84 : i32
    %245 = vector.broadcast %c84_i32 : i32 to vector<2x128xi32>
    %246 = arith.cmpi slt, %211, %245 : vector<2x128xi32>
    %cst_87 = arith.constant 0x7F800000 : f32
    %247 = vector.broadcast %cst_87 : f32 to vector<2x128xf32>
    %248 = arith.select %246, %243, %247 : vector<2x128xi1>, vector<2x128xf32>
    %249 = vector.shape_cast %248 : vector<2x128xf32> to vector<1x2x128xf32>
    %cst_88 = arith.constant dense<0x7F800000> : vector<1xf32>
    %250 = vector.multi_reduction <minimumf>, %249, %cst_88 [1, 2] : vector<1x2x128xf32> to vector<1xf32>
    %251 = vector.shape_cast %250 : vector<1xf32> to vector<1x1x1xf32>
    %252 = vector.extract %251[0, 0, 0] : f32 from vector<1x1x1xf32>
    %253 = vector.broadcast %252 : f32 to vector<1x1xf32>
    %c84_i32_89 = arith.constant 84 : i32
    %254 = vector.broadcast %c84_i32_89 : i32 to vector<2x128xi32>
    %255 = arith.cmpi slt, %211, %254 : vector<2x128xi32>
    %cst_90 = arith.constant 0xFF800000 : f32
    %256 = vector.broadcast %cst_90 : f32 to vector<2x128xf32>
    %257 = arith.select %255, %243, %256 : vector<2x128xi1>, vector<2x128xf32>
    %258 = vector.shape_cast %257 : vector<2x128xf32> to vector<1x2x128xf32>
    %cst_91 = arith.constant dense<0xFF800000> : vector<1xf32>
    %259 = vector.multi_reduction <maximumf>, %258, %cst_91 [1, 2] : vector<1x2x128xf32> to vector<1xf32>
    %260 = vector.shape_cast %259 : vector<1xf32> to vector<1x1x1xf32>
    %261 = vector.extract %260[0, 0, 0] : f32 from vector<1x1x1xf32>
    %262 = vector.broadcast %261 : f32 to vector<1x1xf32>
    %263 = vector.broadcast %253 : vector<1x1xf32> to vector<2x128xf32>
    %264 = arith.subf %243, %263 : vector<2x128xf32>
    %265 = arith.subf %262, %253 : vector<1x1xf32>
    %266 = tpu.reciprocal %265 {approx = true} : vector<1x1xf32> -> vector<1x1xf32>
    %267 = vector.broadcast %266 : vector<1x1xf32> to vector<2x128xf32>
    %268 = arith.mulf %264, %267 : vector<2x128xf32>
    %c0_92 = arith.constant 0 : index
    %c0_93 = arith.constant 0 : index
    %269 = vector.load %arg15[%c0_92, %c0_93] : memref<2x128xf32, #tpu.memory_space<vmem>>, vector<2x128xf32>
    tpu.vector_store %arg15[%c0_92, %c0_93], %268 {strides = array<i32>} : memref<2x128xf32, #tpu.memory_space<vmem>>, vector<2x128xf32>,
    %c0_94 = arith.constant 0 : index
    %c0_95 = arith.constant 0 : index
    %270 = vector.load %arg6[%c0_94, %c0_95] : memref<128x128xf32, #tpu.memory_space<vmem>>, vector<128x128xf32>
    %cst_96 = arith.constant dense<0.000000e+00> : vector<2x128xf32>
    %271 = tpu.matmul %268, %270, %cst_96 {dimension_numbers = #tpu.dot_dimension_numbers<[1], [0], [0], [1], [0, 0, 1, 1], [], []>} : vector<2x128xf32>, vector<128x128xf32>, vector<2x128xf32> -> vector<2x128xf32>
    %c0_97 = arith.constant 0 : index
    %c0_98 = arith.constant 0 : index
    %272 = vector.load %arg7[%c0_97, %c0_98] : memref<1x128xf32, #tpu.memory_space<vmem>>, vector<1x128xf32>
    %273 = vector.broadcast %272 : vector<1x128xf32> to vector<2x128xf32>
    %274 = arith.addf %271, %273 : vector<2x128xf32>
    %c0_99 = arith.constant 0 : index
    %c0_100 = arith.constant 0 : index
    %275 = vector.load %arg16[%c0_99, %c0_100] : memref<2x128xf32, #tpu.memory_space<vmem>>, vector<2x128xf32>
    tpu.vector_store %arg16[%c0_99, %c0_100], %274 {strides = array<i32>} : memref<2x128xf32, #tpu.memory_space<vmem>>, vector<2x128xf32>,
    return
  }
}

</mosaic_0001>

<bundles_post_ra>
// kernel: garment_classifier_forward.2
= control target key start
LH: loop header
LB: loop body
LE: loop exit
PB: predicated region body
PF: predicated region fallthrough
CT: control target
= control target key end

     0   :  { %v656_v3 = vmov 0.0   ;;  %vm63_vm0 = vcmask 261120   ;;  %s903_s0 = inlined_call_operand.vmem [shape: f32[32,1536], index: 0, kind: input, shape index: {}]   ;;  %s904_s1 = inlined_call_operand.vmem [shape: f32[8,32], index: 1, kind: input, shape index: {}]   ;;  %s905_s2 = inlined_call_operand.vmem [shape: f32[8,1536], index: 2, kind: output, shape index: {0}]   ;;  %s906_s3 = inlined_call_operand.vmem [shape: f32[8,384], index: 3, kind: output, shape index: {1}]   ;;  %s907_s4 = inlined_call_operand.vmem [shape: f32[8,384], index: 4, kind: output, shape index: {2}]  }
   0x1   :  { %v16_v0 = vld [vmem:[%s903_s0 + $0x8] sm:$0xff]  ;;  %v18_v2 = vld [vmem:[%s903_s0 + $0x18] sm:$0xff]  ;;  %131 = vmatprep.mubr.f32.mxu0 %v656_v3  ;;  %202 = vmatprep.mubr.f32.mxu1 %v656_v3  ;;  %v15_v6 = vld [vmem:[%s903_s0] sm:$0xff] }
   0x2   :  { %v28_v1 = vld [vmem:[%s903_s0 + $0x68] sm:$0xff]  ;;  %v30_v5 = vld [vmem:[%s903_s0 + $0x78] sm:$0xff]  ;;  %v27_v7 = vld [vmem:[%s903_s0 + $0x60] sm:$0xff] }
   0x3   :  { %v601_v4 = vpack.c.bf16 %v28_v1, %v16_v0  ;;  %v609_v8 = vpack.c.bf16 %v30_v5, %v18_v2  ;;  %v603_v9 = vpack.c.bf16 %v27_v7, %v15_v6  ;;  %v17_v10 = vld [vmem:[%s903_s0 + $0x10] sm:$0xff]  ;;  %v40_v12 = vld [vmem:[%s903_s0 + $0xc8] sm:$0xff]  ;;  %v42_v15 = vld [vmem:[%s903_s0 + $0xd8] sm:$0xff] }
   0x4   :  { %v29_v11 = vld [vmem:[%s903_s0 + $0x70] sm:$0xff]  ;;  %v52_v14 = vld [vmem:[%s903_s0 + $0x128] sm:$0xff]  ;;  %v54_v16 = vld [vmem:[%s903_s0 + $0x138] sm:$0xff] }
   0x5   :  { %602 = vmatprep.subr.bf16.mxu0 %v601_v4  ;;  %v611_v13 = vpack.c.bf16 %v29_v11, %v17_v10  ;;  %610 = vmatprep.subr.bf16.mxu1 %v609_v8  ;;  %v605_v17 = vpack.c.bf16 %v52_v14, %v40_v12  ;;  %v613_v18 = vpack.c.bf16 %v54_v16, %v42_v15  ;;  %v39_v19 = vld [vmem:[%s903_s0 + $0xc0] sm:$0xff]  ;;  %v41_v21 = vld [vmem:[%s903_s0 + $0xd0] sm:$0xff]  ;;  %v20_v24 = vld [vmem:[%s903_s0 + $0x28] sm:$0xff] }
   0x6   :  { %604 = vmatpush1.bf16.msra.mxu0 %v603_v9  ;;  %v51_v20 = vld [vmem:[%s903_s0 + $0x120] sm:$0xff]  ;;  %v53_v23 = vld [vmem:[%s903_s0 + $0x130] sm:$0xff]  ;;  %v32_v27 = vld [vmem:[%s903_s0 + $0x88] sm:$0xff] }
   0x7   :  { %612 = vmatpush1.bf16.msra.mxu1 %v611_v13  ;;  %v607_v22 = vpack.c.bf16 %v51_v20, %v39_v19  ;;  %606 = vmatprep.subr.bf16.mxu0 %v605_v17  ;;  %v615_v25 = vpack.c.bf16 %v53_v23, %v41_v21  ;;  %v738_v26 = vld [vmem:[%s904_s1] sm:$0xff]  ;;  %v22_v28 = vld [vmem:[%s903_s0 + $0x38] sm:$0xff]  ;;  %v617_v30 = vpack.c.bf16 %v32_v27, %v20_v24  ;;  %v21_v34 = vld [vmem:[%s903_s0 + $0x30] sm:$0xff] }
   0x8   :  { %614 = vmatprep.subr.bf16.mxu1 %v613_v18  ;;  %v34_v29 = vld [vmem:[%s903_s0 + $0x98] sm:$0xff]  ;;  %v19_v32 = vld [vmem:[%s903_s0 + $0x20] sm:$0xff]  ;;  %v33_v36 = vld [vmem:[%s903_s0 + $0x90] sm:$0xff]  ;;  %v529_v18 = vlaneseq }
   0x9   :  { %v625_v31 = vpack.c.bf16 %v34_v29, %v22_v28  ;;  %v31_v33 = vld [vmem:[%s903_s0 + $0x80] sm:$0xff]  ;;  %v44_v37 = vld [vmem:[%s903_s0 + $0xe8] sm:$0xff]  ;;  %v627_v39 = vpack.c.bf16 %v33_v36, %v21_v34  ;;  %v46_v41 = vld [vmem:[%s903_s0 + $0xf8] sm:$0xff] }
   0xa   :  { %608 = vmatpush1.bf16.msra.mxu0 %v607_v22  ;;  %v619_v35 = vpack.c.bf16 %v31_v33, %v19_v32  ;;  %v56_v38 = vld [vmem:[%s903_s0 + $0x148] sm:$0xff]  ;;  %v58_v42 = vld [vmem:[%s903_s0 + $0x158] sm:$0xff]  ;;  %v43_v43 = vld [vmem:[%s903_s0 + $0xe0] sm:$0xff]  ;;  %v532_v28 = vand.u32 127, %v529_v18 }
   0xb   :  { %616 = vmatpush1.bf16.msra.mxu1 %v615_v25  ;;  %618 = vmatprep.subr.bf16.mxu0 %v617_v30  ;;  %v621_v40 = vpack.c.bf16 %v56_v38, %v44_v37  ;;  %v629_v44 = vpack.c.bf16 %v58_v42, %v46_v41  ;;  %v55_v45 = vld [vmem:[%s903_s0 + $0x140] sm:$0xff]  ;;  %v45_v46 = vld [vmem:[%s903_s0 + $0xf0] sm:$0xff]  ;;  %v24_v48 = vld [vmem:[%s903_s0 + $0x48] sm:$0xff]  ;;  %v530_v30 = vshrl.u32 %v529_v18, 7 }
   0xc   :  { %626 = vmatprep.subr.bf16.mxu1 %v625_v31  ;;  %v57_v47 = vld [vmem:[%s903_s0 + $0x150] sm:$0xff]  ;;  %v36_v49 = vld [vmem:[%s903_s0 + $0xa8] sm:$0xff]  ;;  %v26_v50 = vld [vmem:[%s903_s0 + $0x58] sm:$0xff]  ;;  %v623_v51 = vpack.c.bf16 %v55_v45, %v43_v43  ;;  %v534_v31 = vadd.s32 256, %v532_v28 }
   0xd   :  { %595 = vmatmul.mubr.msk.f32.vlgmr.msra.gmra.mrb[0].mxu0 %vm63_vm0, %v738_v26  ;;  %v38_v52 = vld [vmem:[%s903_s0 + $0xb8] sm:$0xff]  ;;  %v631_v53 = vpack.c.bf16 %v57_v47, %v45_v46  ;;  %v633_v54 = vpack.c.bf16 %v36_v49, %v24_v48  ;;  %v23_v55 = vld [vmem:[%s903_s0 + $0x40] sm:$0xff]  ;;  %v25_v57 = vld [vmem:[%s903_s0 + $0x50] sm:$0xff]  ;;  %vm535_vm1 = vcmp.lt.s32.totalorder %v530_v30, 6 }
   0xe   :  { %596 = vmatmul.mubr.msk.f32.vlgmr.msra.gmra.mrb[0].mxu1 %vm63_vm0, %v738_v26  ;;  %620 = vmatpush1.bf16.msra.mxu0 %v619_v35  ;;  %v35_v56 = vld [vmem:[%s903_s0 + $0xa0] sm:$0xff]  ;;  %v641_v58 = vpack.c.bf16 %v38_v52, %v26_v50  ;;  %v37_v59 = vld [vmem:[%s903_s0 + $0xb0] sm:$0xff]  ;;  %v48_v60 = vld [vmem:[%s903_s0 + $0x108] sm:$0xff]  ;;  %vm538_vm2 = vcmp.lt.s32.totalorder %v534_v31, 288 }
   0xf   :  { %628 = vmatpush1.bf16.msra.mxu1 %v627_v39  ;;  %622 = vmatprep.subr.bf16.mxu0 %v621_v40  ;;  %v60_v61 = vld [vmem:[%s903_s0 + $0x168] sm:$0xff]  ;;  %v50_v62 = vld [vmem:[%s903_s0 + $0x118] sm:$0xff]  ;;  %v635_v0 = vpack.c.bf16 %v35_v56, %v23_v55  ;;  %v643_v1 = vpack.c.bf16 %v37_v59, %v25_v57  ;;  %v47_v4 = vld [vmem:[%s903_s0 + $0x100] sm:$0xff] }
  0x10   :  { %630 = vmatprep.subr.bf16.mxu1 %v629_v44  ;;  %273 = vmatprep.mubr.f32.mxu0 %v656_v3  ;;  %v62_v63 = vld [vmem:[%s903_s0 + $0x178] sm:$0xff]  ;;  %v637_v2 = vpack.c.bf16 %v60_v61, %v48_v60  ;;  %v59_v5 = vld [vmem:[%s903_s0 + $0x160] sm:$0xff]  ;;  %v49_v7 = vld [vmem:[%s903_s0 + $0x110] sm:$0xff] }
  0x11   :  { %344 = vmatprep.mubr.f32.mxu1 %v656_v3  ;;  %v645_v6 = vpack.c.bf16 %v62_v63, %v50_v62  ;;  %v61_v8 = vld [vmem:[%s903_s0 + $0x170] sm:$0xff]  ;;  %v639_v9 = vpack.c.bf16 %v59_v5, %v47_v4  ;;  %vm541_vm3 = vmand %vm535_vm1, %vm538_vm2 }
  0x12   :  { %624 = vmatpush1.bf16.msra.mxu0 %v623_v51  ;;  %v647_v10 = vpack.c.bf16 %v61_v8, %v49_v7 }
  0x13   :  { %632 = vmatpush1.bf16.msra.mxu1 %v631_v53  ;;  %634 = vmatprep.subr.bf16.mxu0 %v633_v54 }
  0x14   :  { %642 = vmatprep.subr.bf16.mxu1 %v641_v58 }
  0x15   :  { %597 = vmatmul.mubr.msk.f32.vlgmr.msra.gmra.mrb[2].mxu0 %vm63_vm0, %v738_v26 }
  0x16   :  { %598 = vmatmul.mubr.msk.f32.vlgmr.msra.gmra.mrb[2].mxu1 %vm63_vm0, %v738_v26  ;;  %636 = vmatpush1.bf16.msra.mxu0 %v635_v0 }
  0x17   :  { %644 = vmatpush1.bf16.msra.mxu1 %v643_v1  ;;  %638 = vmatprep.subr.bf16.mxu0 %v637_v2 }
  0x18   :  { %646 = vmatprep.subr.bf16.mxu1 %v645_v6  ;;  %415 = vmatprep.mubr.f32.mxu0 %v656_v3 }
  0x19   :  { %486 = vmatprep.mubr.f32.mxu1 %v656_v3 }
  0x1a   :  { %640 = vmatpush1.bf16.msra.mxu0 %v639_v9 }
  0x1b   :  { %648 = vmatpush1.bf16.msra.mxu1 %v647_v10 }
  0x1d   :  { %599 = vmatmul.mubr.msk.f32.vlgmr.msra.gmra.mrb[4].mxu0 %vm63_vm0, %v738_v26 }
  0x1e   :  { %600 = vmatmul.mubr.msk.f32.vlgmr.msra.gmra.mrb[4].mxu1 %vm63_vm0, %v738_v26 }
  0xe0   :  { %v133_v11 = vpop.f32.mrb[0].mxu0 }
  0xe1   :  { %493 = vst [vmem:[%s905_s2] sm:$0xff] %v133_v11  ;;  %v505_v12 = vmax.f32 %v133_v11, 0.0  ;;  %v204_v13 = vpop.f32.mrb[0].mxu1  ;;  %v135_v14 = vpop.f32.mrb[1].mxu0 }
  0xe2   :  { %495 = vst [vmem:[%s905_s2 + $0x10] sm:$0xff] %v204_v13  ;;  %494 = vst [vmem:[%s905_s2 + $0x8] sm:$0xff] %v135_v14  ;;  %v206_v3 = vpop.f32.mrb[1].mxu1  ;;  %v506_v19 = vmax.f32 %v135_v14, 0.0  ;;  %v507_v23 = vmax.f32 %v204_v13, 0.0 }
  0xe3   :  { %496 = vst [vmem:[%s905_s2 + $0x18] sm:$0xff] %v206_v3  ;;  %v508_v15 = vmax.f32 %v206_v3, 0.0 }
  0xe5   :  { %v517_v16 = vmax.f32 %v505_v12, %v508_v15 }
  0xe8   :  { %v275_v17 = vpop.f32.mrb[2].mxu0 }
  0xe9   :  { %497 = vst [vmem:[%s905_s2 + $0x20] sm:$0xff] %v275_v17  ;;  %v509_v20 = vmax.f32 %v275_v17, 0.0  ;;  %v277_v21 = vpop.f32.mrb[3].mxu0  ;;  %v346_v22 = vpop.f32.mrb[2].mxu1 }
  0xea   :  { %498 = vst [vmem:[%s905_s2 + $0x28] sm:$0xff] %v277_v21  ;;  %v510_v24 = vmax.f32 %v277_v21, 0.0  ;;  %499 = vst [vmem:[%s905_s2 + $0x30] sm:$0xff] %v346_v22  ;;  %v348_v25 = vpop.f32.mrb[3].mxu1  ;;  %v511_v35 = vmax.f32 %v346_v22, 0.0 }
  0xeb   :  { %v518_v26 = vmax.f32 %v506_v19, %v509_v20  ;;  %500 = vst [vmem:[%s905_s2 + $0x38] sm:$0xff] %v348_v25  ;;  %v512_v36 = vmax.f32 %v348_v25, 0.0 }
  0xec   :  { %v519_v27 = vmax.f32 %v507_v23, %v510_v24 }
  0xf0   :  { %v417_v29 = vpop.f32.mrb[4].mxu0 }
  0xf1   :  { %501 = vst [vmem:[%s905_s2 + $0x40] sm:$0xff] %v417_v29  ;;  %v513_v32 = vmax.f32 %v417_v29, 0.0  ;;  %v488_v33 = vpop.f32.mrb[4].mxu1  ;;  %v419_v34 = vpop.f32.mrb[5].mxu0 }
  0xf2   :  { %503 = vst [vmem:[%s905_s2 + $0x50] sm:$0xff] %v488_v33  ;;  %v515_v37 = vmax.f32 %v488_v33, 0.0  ;;  %502 = vst [vmem:[%s905_s2 + $0x48] sm:$0xff] %v419_v34  ;;  %v514_v38 = vmax.f32 %v419_v34, 0.0  ;;  %v490_v39 = vpop.f32.mrb[5].mxu1 }
  0xf3   :  { %504 = vst [vmem:[%s905_s2 + $0x58] sm:$0xff] %v490_v39  ;;  %v516_v40 = vmax.f32 %v490_v39, 0.0 }
  0xf4   :  { %v521_v41 = vmax.f32 %v512_v36, %v515_v37  ;;  %v520_v42 = vmax.f32 %v511_v35, %v514_v38 }
  0xf5   :  { %v522_v43 = vmax.f32 %v513_v32, %v516_v40 }
  0xf6   :  { %v524_v44 = vmax.f32 %v518_v26, %v521_v41  ;;  %v523_v45 = vmax.f32 %v517_v16, %v520_v42 }
  0xf7   :  { %v525_v46 = vmax.f32 %v519_v27, %v522_v43 }
  0xf8   :  { %527 = vst [vmem:[%s906_s3 + $0x8] sm:$0xff] %v524_v44  ;;  %526 = vst [vmem:[%s906_s3] sm:$0xff] %v523_v45  ;;  %v542_v47 = vsel %vm535_vm1, %v523_v45, inf  ;;  %v543_v48 = vsel %vm535_vm1, %v524_v44, inf  ;;  %v557_v49 = vsel %vm535_vm1, %v523_v45, -inf  ;;  %v558_v50 = vsel %vm535_vm1, %v524_v44, -inf }
  0xf9   :  { %528 = vst [vmem:[%s906_s3 + $0x10] sm:$0xff] %v525_v46  ;;  %v545_v51 = vmin.f32 %v542_v47, %v543_v48  ;;  %v544_v52 = vsel %vm541_vm3, %v525_v46, inf  ;;  %v560_v54 = vmax.f32 %v557_v49, %v558_v50  ;;  %v559_v55 = vsel %vm541_vm3, %v525_v46, -inf }
  0xfb   :  { %v546_v53 = vmin.f32 %v545_v51, %v544_v52  ;;  %v561_v56 = vmax.f32 %v560_v54, %v559_v55 }
  0xfd   :  { %547 = vmin.xlane.f32.xlu0 %v546_v53 }
 0x101   :  { %562 = vmax.xlane.f32.xlu0 %v561_v56 }
 0x18a   :  { %v548_v57 = vpop.xlane.xlu0 %547 }
 0x18b   :  { %v549_v58 = vrot.slane %v548_v57, 4 }
 0x18d   :  { %v550_v59 = vmin.f32 %v548_v57, %v549_v58 }
 0x18e   :  { %v563_v60 = vpop.xlane.xlu0 %562 }
 0x18f   :  { %v551_v61 = vrot.slane %v550_v59, 2  ;;  %v564_v62 = vrot.slane %v563_v60, 4 }
 0x191   :  { %v565_v63 = vmax.f32 %v563_v60, %v564_v62  ;;  %v552_v0 = vmin.f32 %v550_v59, %v551_v61 }
 0x193   :  { %v566_v1 = vrot.slane %v565_v63, 2  ;;  %v553_v2 = vrot.slane %v552_v0, 1 }
 0x195   :  { %v567_v4 = vmax.f32 %v565_v63, %v566_v1  ;;  %v554_v5 = vmin.f32 %v552_v0, %v553_v2 }
 0x197   :  { %649 = vpush %v554_v5  ;;  %v568_v6 = vrot.slane %v567_v4, 1 }
 0x199   :  { %v569_v7 = vmax.f32 %v567_v4, %v568_v6 }
 0x19b   :  { %651 = vpush %v569_v7 }
 0x1c8   :  { %s650_s3 = spop %649 }
 0x1c9   :  { %v556_v8 = vstv %s650_s3 }
 0x1ca   :  { %v572_v11 = vsub.f32 %v523_v45, %v556_v8  ;;  %v573_v12 = vsub.f32 %v524_v44, %v556_v8  ;;  %v574_v13 = vsub.f32 %v525_v46, %v556_v8 }
 0x1cc   :  { %s652_s1 = spop %651 }
 0x1cd   :  { %v571_v9 = vstv %s652_s1 }
 0x1ce   :  { %v575_v10 = vsub.f32 %v571_v9, %v556_v8 }
 0x1d0   :  { %654 = vrcp.f32 %v575_v10 }
 0x1da   :  { %v655_v14 = vpop.eup %654 }
 0x1db   :  { %v577_v3 = vmul.f32 %v655_v14, %v572_v11  ;;  %v578_v15 = vmul.f32 %v655_v14, %v573_v12  ;;  %v579_v16 = vmul.f32 %v655_v14, %v574_v13 }
 0x1dd   :  { %580 = vst [vmem:[%s907_s4] sm:$0xff] %v577_v3  ;;  %581 = vst [vmem:[%s907_s4 + $0x8] sm:$0xff] %v578_v15 }
 0x1de   :  { %582 = vst [vmem:[%s907_s4 + $0x10] sm:$0xff] %v579_v16 }

// kernel: garment_classifier_forward.3
= control target key start
LH: loop header
LB: loop body
LE: loop exit
PB: predicated region body
PF: predicated region fallthrough
CT: control target
= control target key end

     0   :  { %s2271_s0 = inlined_call_operand.vmem [shape: f32[160,512], index: 0, kind: input, shape index: {}]   ;;  %s2272_s1 = inlined_call_operand.vmem [shape: f32[16,160], index: 1, kind: input, shape index: {}]   ;;  %s2273_s2 = inlined_call_operand.vmem [shape: f32[256,128], index: 2, kind: input, shape index: {}]   ;;  %s2274_s3 = inlined_call_operand.vmem [shape: f32[1,128], index: 3, kind: input, shape index: {}]   ;;  %s2275_s4 = inlined_call_operand.vmem [shape: f32[128,128], index: 4, kind: input, shape index: {}]   ;;  %s2276_s5 = inlined_call_operand.vmem [shape: f32[1,128], index: 5, kind: input, shape index: {}]   ;;  %s2277_s6 = inlined_call_operand.vmem [shape: f32[128,128], index: 6, kind: input, shape index: {}]   ;;  %s2278_s7 = inlined_call_operand.vmem [shape: f32[1,128], index: 7, kind: input, shape index: {}]   ;;  %s2279_s8 = inlined_call_operand.vmem [shape: f32[16,512], index: 8, kind: output, shape index: {0}]   ;;  %s2280_s9 = inlined_call_operand.vmem [shape: f32[16,128], index: 9, kind: output, shape index: {1}]   ;;  %s2281_s10 = inlined_call_operand.vmem [shape: f32[16,128], index: 10, kind: output, shape index: {2}]   ;;  %s2282_s11 = inlined_call_operand.hbm [shape: f32[2,256], index: 11, kind: output, shape index: {3}]   ;;  %s2283_s12 = inlined_call_operand.hbm [shape: f32[2,128], index: 12, kind: output, shape index: {4}]   ;;  %s2284_s13 = inlined_call_operand.hbm [shape: f32[2,128], index: 13, kind: output, shape index: {5}]   ;;  %s2285_s14 = inlined_call_operand.hbm [shape: f32[2,128], index: 14, kind: output, shape index: {6}]   ;;  %s2286_s15 = inlined_call_operand.hbm [shape: f32[2,128], index: 15, kind: output, shape index: {7}]   ;;  %s2287_s16 = inlined_call_operand.hbm [shape: f32[2,128], index: 16, kind: output, shape index: {8}]  }
   0x1   :  { %2289 = sst [smem:[#allocation16_spill]] %s2271_s0 }
   0x2   :  { %22 = vsyncpa [#allocation3], 0 }
   0x3   :  { %23 = vsyncpa [#allocation5], 0 }
   0x4   :  { %24 = vsyncpa [#allocation8], 0  ;;  %s2290_s23 = sld [smem:[#allocation16_spill]]  ;;  %vm126_vm0 = vcmask 261120  }
   0xa   :  { %v47_v0 = vld [vmem:[%s2290_s23 + $0x8] sm:$0xff]  ;;  %v49_v2 = vld [vmem:[%s2290_s23 + $0x18] sm:$0xff]  ;;  %v46_v5 = vld [vmem:[%s2290_s23] sm:$0xff] }
   0xb   :  { %v51_v1 = vld [vmem:[%s2290_s23 + $0x28] sm:$0xff]  ;;  %v53_v4 = vld [vmem:[%s2290_s23 + $0x38] sm:$0xff]  ;;  %v50_v6 = vld [vmem:[%s2290_s23 + $0x20] sm:$0xff] }
   0xc   :  { %v1147_v3 = vpack.c.bf16 %v51_v1, %v47_v0  ;;  %v1187_v7 = vpack.c.bf16 %v53_v4, %v49_v2  ;;  %v1149_v8 = vpack.c.bf16 %v50_v6, %v46_v5  ;;  %v48_v9 = vld [vmem:[%s2290_s23 + $0x10] sm:$0xff]  ;;  %v55_v11 = vld [vmem:[%s2290_s23 + $0x48] sm:$0xff]  ;;  %v57_v14 = vld [vmem:[%s2290_s23 + $0x58] sm:$0xff] }
   0xd   :  { %v52_v10 = vld [vmem:[%s2290_s23 + $0x30] sm:$0xff]  ;;  %v59_v13 = vld [vmem:[%s2290_s23 + $0x68] sm:$0xff]  ;;  %v61_v15 = vld [vmem:[%s2290_s23 + $0x78] sm:$0xff] }
   0xe   :  { %1148 = vmatprep.subr.bf16.mxu0 %v1147_v3  ;;  %v1189_v12 = vpack.c.bf16 %v52_v10, %v48_v9  ;;  %1188 = vmatprep.subr.bf16.mxu1 %v1187_v7  ;;  %v1151_v16 = vpack.c.bf16 %v59_v13, %v55_v11  ;;  %v1191_v17 = vpack.c.bf16 %v61_v15, %v57_v14  ;;  %v54_v18 = vld [vmem:[%s2290_s23 + $0x40] sm:$0xff]  ;;  %v56_v20 = vld [vmem:[%s2290_s23 + $0x50] sm:$0xff]  ;;  %v63_v23 = vld [vmem:[%s2290_s23 + $0x88] sm:$0xff] }
   0xf   :  { %1150 = vmatpush1.bf16.msra.mxu0 %v1149_v8  ;;  %v58_v19 = vld [vmem:[%s2290_s23 + $0x60] sm:$0xff]  ;;  %v60_v22 = vld [vmem:[%s2290_s23 + $0x70] sm:$0xff]  ;;  %v67_v24 = vld [vmem:[%s2290_s23 + $0xa8] sm:$0xff] }
  0x10   :  { %1190 = vmatpush1.bf16.msra.mxu1 %v1189_v12  ;;  %v1153_v21 = vpack.c.bf16 %v58_v19, %v54_v18  ;;  %1152 = vmatprep.subr.bf16.mxu0 %v1151_v16  ;;  %v1193_v25 = vpack.c.bf16 %v60_v22, %v56_v20  ;;  %v1155_v26 = vpack.c.bf16 %v67_v24, %v63_v23  ;;  %v65_v27 = vld [vmem:[%s2290_s23 + $0x98] sm:$0xff]  ;;  %v62_v29 = vld [vmem:[%s2290_s23 + $0x80] sm:$0xff]  ;;  %v64_v32 = vld [vmem:[%s2290_s23 + $0x90] sm:$0xff] }
  0x11   :  { %1192 = vmatprep.subr.bf16.mxu1 %v1191_v17  ;;  %v69_v28 = vld [vmem:[%s2290_s23 + $0xb8] sm:$0xff]  ;;  %v66_v31 = vld [vmem:[%s2290_s23 + $0xa0] sm:$0xff]  ;;  %v68_v33 = vld [vmem:[%s2290_s23 + $0xb0] sm:$0xff] }
  0x12   :  { %v1195_v30 = vpack.c.bf16 %v69_v28, %v65_v27  ;;  %v1157_v34 = vpack.c.bf16 %v66_v31, %v62_v29  ;;  %v71_v35 = vld [vmem:[%s2290_s23 + $0xc8] sm:$0xff]  ;;  %v73_v37 = vld [vmem:[%s2290_s23 + $0xd8] sm:$0xff]  ;;  %v1197_v38 = vpack.c.bf16 %v68_v33, %v64_v32  ;;  %v70_v41 = vld [vmem:[%s2290_s23 + $0xc0] sm:$0xff] }
  0x13   :  { %1154 = vmatpush1.bf16.msra.mxu0 %v1153_v21  ;;  %v75_v36 = vld [vmem:[%s2290_s23 + $0xe8] sm:$0xff]  ;;  %v77_v40 = vld [vmem:[%s2290_s23 + $0xf8] sm:$0xff]  ;;  %v74_v42 = vld [vmem:[%s2290_s23 + $0xe0] sm:$0xff] }
  0x14   :  { %1194 = vmatpush1.bf16.msra.mxu1 %v1193_v25  ;;  %1156 = vmatprep.subr.bf16.mxu0 %v1155_v26  ;;  %v1159_v39 = vpack.c.bf16 %v75_v36, %v71_v35  ;;  %v1199_v43 = vpack.c.bf16 %v77_v40, %v73_v37  ;;  %v72_v44 = vld [vmem:[%s2290_s23 + $0xd0] sm:$0xff]  ;;  %v79_v46 = vld [vmem:[%s2290_s23 + $0x108] sm:$0xff]  ;;  %v81_v48 = vld [vmem:[%s2290_s23 + $0x118] sm:$0xff]  ;;  %v1161_v50 = vpack.c.bf16 %v74_v42, %v70_v41 }
  0x15   :  { %1196 = vmatprep.subr.bf16.mxu1 %v1195_v30  ;;  %v76_v45 = vld [vmem:[%s2290_s23 + $0xf0] sm:$0xff]  ;;  %v83_v47 = vld [vmem:[%s2290_s23 + $0x128] sm:$0xff]  ;;  %v85_v49 = vld [vmem:[%s2290_s23 + $0x138] sm:$0xff] }
  0x16   :  { %v1201_v51 = vpack.c.bf16 %v76_v45, %v72_v44  ;;  %v1163_v52 = vpack.c.bf16 %v83_v47, %v79_v46  ;;  %v78_v53 = vld [vmem:[%s2290_s23 + $0x100] sm:$0xff]  ;;  %v80_v55 = vld [vmem:[%s2290_s23 + $0x110] sm:$0xff]  ;;  %v1203_v56 = vpack.c.bf16 %v85_v49, %v81_v48  ;;  %v87_v58 = vld [vmem:[%s2290_s23 + $0x148] sm:$0xff] }
  0x17   :  { %1158 = vmatpush1.bf16.msra.mxu0 %v1157_v34  ;;  %v82_v54 = vld [vmem:[%s2290_s23 + $0x120] sm:$0xff]  ;;  %v84_v57 = vld [vmem:[%s2290_s23 + $0x130] sm:$0xff]  ;;  %v91_v59 = vld [vmem:[%s2290_s23 + $0x168] sm:$0xff] }
  0x18   :  { %1198 = vmatpush1.bf16.msra.mxu1 %v1197_v38  ;;  %1160 = vmatprep.subr.bf16.mxu0 %v1159_v39  ;;  %v89_v60 = vld [vmem:[%s2290_s23 + $0x158] sm:$0xff]  ;;  %v1165_v62 = vpack.c.bf16 %v82_v54, %v78_v53  ;;  %v1205_v63 = vpack.c.bf16 %v84_v57, %v80_v55  ;;  %v1167_v0 = vpack.c.bf16 %v91_v59, %v87_v58  ;;  %v86_v1 = vld [vmem:[%s2290_s23 + $0x140] sm:$0xff]  ;;  %v88_v3 = vld [vmem:[%s2290_s23 + $0x150] sm:$0xff] }
  0x19   :  { %1200 = vmatprep.subr.bf16.mxu1 %v1199_v43  ;;  %v93_v61 = vld [vmem:[%s2290_s23 + $0x178] sm:$0xff]  ;;  %v90_v2 = vld [vmem:[%s2290_s23 + $0x160] sm:$0xff]  ;;  %v92_v5 = vld [vmem:[%s2290_s23 + $0x170] sm:$0xff] }
  0x1a   :  { %v1207_v4 = vpack.c.bf16 %v93_v61, %v89_v60  ;;  %v95_v6 = vld [vmem:[%s2290_s23 + $0x188] sm:$0xff]  ;;  %v97_v8 = vld [vmem:[%s2290_s23 + $0x198] sm:$0xff]  ;;  %v1169_v10 = vpack.c.bf16 %v90_v2, %v86_v1  ;;  %v1209_v11 = vpack.c.bf16 %v92_v5, %v88_v3  ;;  %v94_v13 = vld [vmem:[%s2290_s23 + $0x180] sm:$0xff] }
  0x1b   :  { %1162 = vmatpush1.bf16.msra.mxu0 %v1161_v50  ;;  %v99_v7 = vld [vmem:[%s2290_s23 + $0x1a8] sm:$0xff]  ;;  %v101_v9 = vld [vmem:[%s2290_s23 + $0x1b8] sm:$0xff]  ;;  %v98_v14 = vld [vmem:[%s2290_s23 + $0x1a0] sm:$0xff] }
  0x1c   :  { %1202 = vmatpush1.bf16.msra.mxu1 %v1201_v51  ;;  %1164 = vmatprep.subr.bf16.mxu0 %v1163_v52  ;;  %v1171_v12 = vpack.c.bf16 %v99_v7, %v95_v6  ;;  %v96_v15 = vld [vmem:[%s2290_s23 + $0x190] sm:$0xff]  ;;  %v1211_v16 = vpack.c.bf16 %v101_v9, %v97_v8  ;;  %v103_v18 = vld [vmem:[%s2290_s23 + $0x1c8] sm:$0xff]  ;;  %v105_v20 = vld [vmem:[%s2290_s23 + $0x1d8] sm:$0xff]  ;;  %v1173_v22 = vpack.c.bf16 %v98_v14, %v94_v13 }
  0x1d   :  { %1204 = vmatprep.subr.bf16.mxu1 %v1203_v56  ;;  %v100_v17 = vld [vmem:[%s2290_s23 + $0x1b0] sm:$0xff]  ;;  %v107_v19 = vld [vmem:[%s2290_s23 + $0x1e8] sm:$0xff]  ;;  %v109_v21 = vld [vmem:[%s2290_s23 + $0x1f8] sm:$0xff] }
  0x1e   :  { %v102_v23 = vld [vmem:[%s2290_s23 + $0x1c0] sm:$0xff]  ;;  %v1213_v24 = vpack.c.bf16 %v100_v17, %v96_v15  ;;  %v1175_v25 = vpack.c.bf16 %v107_v19, %v103_v18  ;;  %v104_v27 = vld [vmem:[%s2290_s23 + $0x1d0] sm:$0xff]  ;;  %v1215_v29 = vpack.c.bf16 %v109_v21, %v105_v20  ;;  %v111_v30 = vld [vmem:[%s2290_s23 + $0x208] sm:$0xff] }
  0x1f   :  { %1166 = vmatpush1.bf16.msra.mxu0 %v1165_v62  ;;  %v106_v26 = vld [vmem:[%s2290_s23 + $0x1e0] sm:$0xff]  ;;  %v108_v28 = vld [vmem:[%s2290_s23 + $0x1f0] sm:$0xff]  ;;  %v115_v31 = vld [vmem:[%s2290_s23 + $0x228] sm:$0xff] }
  0x20   :  { %1206 = vmatpush1.bf16.msra.mxu1 %v1205_v63  ;;  %1168 = vmatprep.subr.bf16.mxu0 %v1167_v0  ;;  %v43_v32 = vld [vmem:[%s2272_s1 + $0x8] sm:$0xff]  ;;  %v113_v33 = vld [vmem:[%s2290_s23 + $0x218] sm:$0xff]  ;;  %v1177_v35 = vpack.c.bf16 %v106_v26, %v102_v23 }
  0x21   :  { %1208 = vmatprep.subr.bf16.mxu1 %v1207_v4  ;;  %v117_v34 = vld [vmem:[%s2290_s23 + $0x238] sm:$0xff]  ;;  %1000 = vmatprep.mubr.msk.f32.mxu0 %vm126_vm0, %v43_v32 }
  0x22   :  { %1002 = vmatprep.mubr.msk.f32.mxu1 %vm126_vm0, %v43_v32 }
  0x23   :  { %1170 = vmatpush1.bf16.msra.mxu0 %v1169_v10 }
  0x24   :  { %1210 = vmatpush1.bf16.msra.mxu1 %v1209_v11  ;;  %1172 = vmatprep.subr.bf16.mxu0 %v1171_v12 }
  0x25   :  { %1212 = vmatprep.subr.bf16.mxu1 %v1211_v16 }
  0x27   :  { %1174 = vmatpush1.bf16.msra.mxu0 %v1173_v22 }
  0x28   :  { %25 = vsyncpa [#allocation11], 0  ;;  %1214 = vmatpush1.bf16.msra.mxu1 %v1213_v24  ;;  %1176 = vmatprep.subr.bf16.mxu0 %v1175_v25  ;;  %v1217_v36 = vpack.c.bf16 %v108_v28, %v104_v27  ;;  %v1179_v37 = vpack.c.bf16 %v115_v31, %v111_v30  ;;  %v110_v38 = vld [vmem:[%s2290_s23 + $0x200] sm:$0xff]  ;;  %v112_v40 = vld [vmem:[%s2290_s23 + $0x210] sm:$0xff]  ;;  %v1219_v41 = vpack.c.bf16 %v117_v34, %v113_v33  ;;  %v314_v3 = vlaneseq  ;;  %s1483_s28 = smov 112   ;;  %s1484_s29 = smov 64  }
  0x29   :  { %v114_v39 = vld [vmem:[%s2290_s23 + $0x220] sm:$0xff]  ;;  %1216 = vmatprep.subr.bf16.mxu1 %v1215_v29  ;;  %v116_v42 = vld [vmem:[%s2290_s23 + $0x230] sm:$0xff]  ;;  %v119_v43 = vld [vmem:[%s2290_s23 + $0x248] sm:$0xff]  ;;  %vm355_vm2 = vcmask 122880   ;;  %s1485_s30 = smov 48   ;;  %s1487_s0 = smov 16  }
  0x2a   :  { %v123_v44 = vld [vmem:[%s2290_s23 + $0x268] sm:$0xff]  ;;  %v121_v45 = vld [vmem:[%s2290_s23 + $0x258] sm:$0xff]  ;;  %v1181_v47 = vpack.c.bf16 %v114_v39, %v110_v38  ;;  %v1221_v48 = vpack.c.bf16 %v116_v42, %v112_v40  ;;  %v118_v50 = vld [vmem:[%s2290_s23 + $0x240] sm:$0xff]  ;;  %v1861_v14 = vand.u32 127, %v314_v3  ;;  %s1488_s17 = smov 96   ;;  %s1489_s18 = smov 80  }
  0x2b   :  { %v125_v46 = vld [vmem:[%s2290_s23 + $0x278] sm:$0xff]  ;;  %1178 = vmatpush1.bf16.msra.mxu0 %v1177_v35  ;;  %v1183_v49 = vpack.c.bf16 %v123_v44, %v119_v43  ;;  %v122_v51 = vld [vmem:[%s2290_s23 + $0x260] sm:$0xff]  ;;  %v120_v53 = vld [vmem:[%s2290_s23 + $0x250] sm:$0xff]  ;;  %v1482_v43 = vmov 1983009808   ;;  %vm370_vm3 = vcmask 254080  }
  0x2c   :  { %1218 = vmatpush1.bf16.msra.mxu1 %v1217_v36  ;;  %1180 = vmatprep.subr.bf16.mxu0 %v1179_v37  ;;  %v1223_v52 = vpack.c.bf16 %v125_v46, %v121_v45  ;;  %v124_v54 = vld [vmem:[%s2290_s23 + $0x270] sm:$0xff]  ;;  %v1185_v55 = vpack.c.bf16 %v122_v51, %v118_v50  ;;  %v42_v57 = vld [vmem:[%s2272_s1] sm:$0xff]  ;;  %v45_v58 = vld [vmem:[%s2272_s1 + $0x18] sm:$0xff]  ;;  %vm318_vm1 = vcmp.lt.s32.totalorder %v1861_v14, 32  ;;  %v359_v44 = vunpack.c.l.s4 %v1482_v43  ;;  %s1494_s26 = smov [#allocation7]  }
  0x2d   :  { %1220 = vmatprep.subr.bf16.mxu1 %v1219_v41  ;;  %v1225_v56 = vpack.c.bf16 %v124_v54, %v120_v53  ;;  %v44_v59 = vld [vmem:[%s2272_s1 + $0x10] sm:$0xff]  ;;  %v362_v45 = vshrl.u32 %v314_v3, 7  ;;  %vm376_vm4 = vcmask 385280   ;;  %vm383_vm5 = vcmask 516480   ;;  %s948_s1 = sshll.u32 %s1494_s26, 4  ;;  %s949_s1 = int_to_ptr.vmem [resolvable:$true] %s948_s1 }
  0x2e   :  { %v360_v46 = vunpack.c.0.s8 %v359_v44  ;;  %v560_v43 = vld [vmem:[%s2273_s2 + $0xd0] sm:$0xff]  ;;  %v561_v44 = vld [vmem:[%s2273_s2 + $0xd8] sm:$0xff]  ;;  %vm396_vm6 = vcmask 647680   ;;  %vm403_vm7 = vcmask 778880   ;;  %vm409_vm8 = vcmask 910080  }
  0x2f   :  { %1182 = vmatpush1.bf16.msra.mxu0 %v1181_v47  ;;  %vm416_vm9 = vcmask 1041280   ;;  %vm656_vm10 = vcmp.lt.s32.totalorder %v1861_v14, 120  ;;  %vm658_vm11 = vcmask 1041408   ;;  %vm1491_vm12 = vmmov 0  }
  0x30   :  { %1222 = vmatpush1.bf16.msra.mxu1 %v1221_v48  ;;  %1184 = vmatprep.subr.bf16.mxu0 %v1183_v49  ;;  %v363_v49 = vsub.s32 %v360_v46, %v362_v45  ;;  %v1247_v45 = vpack.c.bf16 %v561_v44, %v560_v43  ;;  %v544_v46 = vld [vmem:[%s2273_s2 + $0x50] sm:$0xff]  ;;  %v1490_v44 = vmov 0.0|0.0   ;;  %vm782_vm13 = vcmp.lt.s32.totalorder %v1861_v14, 84  ;;  %v813_v14 = vld [vmem:[%s2277_s6 + $0x8] sm:$0xff] }
  0x31   :  { %1224 = vmatprep.subr.bf16.mxu1 %v1223_v52  ;;  %v689_v43 = vld [vmem:[%s2275_s4 + $0x10] sm:$0xff] }
  0x33   :  { %1186 = vmatpush1.bf16.msra.mxu0 %v1185_v55 }
  0x34   :  { %1226 = vmatpush1.bf16.msra.mxu1 %v1225_v56 }
  0x35   :  { %1259 = vmatprep.subr.bf16.mxu1 %v1490_v44 }
  0x36   :  { %198 = vmatmul.mubr.f32.vlgmr.msra.gmra.mrb[0].mxu0 %v42_v57 }
  0x37   :  { %275 = vmatmul.mubr.f32.vlgmr.msra.gmra.mrb[0].mxu1 %v42_v57  ;;  %1001 = vmatprep.mubr.msk.f32.mxu0 %vm126_vm0, %v45_v58 }
  0x38   :  { %1003 = vmatprep.mubr.msk.f32.mxu1 %vm126_vm0, %v45_v58 }
  0x3a   :  { %204 = vmatmul.mubr.f32.gmra.mrb[2].mxu0 %v44_v59 }
  0x3b   :  { %281 = vmatmul.mubr.f32.gmra.mrb[2].mxu1 %v44_v59 }
 0x109   :  { %v199_v60 = vpop.f32.mrb[0].mxu0 }
 0x10a   :  { %287 = vst [vmem:[%s2279_s8] sm:$0xff] %v199_v60  ;;  %v295_v61 = vmax.f32 %v199_v60, 0.0  ;;  %v276_v62 = vpop.f32.mrb[0].mxu1  ;;  %v201_v63 = vpop.f32.mrb[1].mxu0 }
 0x10b   :  { %289 = vst [vmem:[%s2279_s8 + $0x10] sm:$0xff] %v276_v62  ;;  %v297_v0 = vmax.f32 %v276_v62, 0.0  ;;  %288 = vst [vmem:[%s2279_s8 + $0x8] sm:$0xff] %v201_v63  ;;  %v296_v1 = vmax.f32 %v201_v63, 0.0  ;;  %v278_v2 = vpop.f32.mrb[1].mxu1 }
 0x10c   :  { %290 = vst [vmem:[%s2279_s8 + $0x18] sm:$0xff] %v278_v2  ;;  %v298_v4 = vmax.f32 %v278_v2, 0.0 }
 0x10d   :  { %v303_v5 = vmax.f32 %v295_v61, %v296_v1  ;;  %v205_v6 = vpop.f32.mrb[2].mxu0 }
 0x10e   :  { %v305_v7 = vmax.f32 %v297_v0, %v298_v4  ;;  %291 = vst [vmem:[%s2279_s8 + $0x20] sm:$0xff] %v205_v6  ;;  %v299_v8 = vmax.f32 %v205_v6, 0.0  ;;  %v282_v9 = vpop.f32.mrb[2].mxu1  ;;  %v207_v10 = vpop.f32.mrb[3].mxu0  ;;  %v551_v6 = vld [vmem:[%s2273_s2 + $0x88] sm:$0xff] }
 0x10f   :  { %293 = vst [vmem:[%s2279_s8 + $0x30] sm:$0xff] %v282_v9  ;;  %v301_v11 = vmax.f32 %v282_v9, 0.0  ;;  %292 = vst [vmem:[%s2279_s8 + $0x28] sm:$0xff] %v207_v10  ;;  %v300_v12 = vmax.f32 %v207_v10, 0.0  ;;  %v284_v13 = vpop.f32.mrb[3].mxu1  ;;  %v535_v9 = vld [vmem:[%s2273_s2 + $0x8] sm:$0xff] }
 0x110   :  { %v307_v15 = vmax.f32 %v303_v5, %v305_v7  ;;  %294 = vst [vmem:[%s2279_s8 + $0x38] sm:$0xff] %v284_v13  ;;  %v302_v16 = vmax.f32 %v284_v13, 0.0  ;;  %v550_v5 = vld [vmem:[%s2273_s2 + $0x80] sm:$0xff]  ;;  %v552_v13 = vld [vmem:[%s2273_s2 + $0x90] sm:$0xff] }
 0x111   :  { %v304_v17 = vmax.f32 %v299_v8, %v300_v12  ;;  %v1227_v7 = vpack.c.bf16 %v551_v6, %v550_v5  ;;  %v534_v8 = vld [vmem:[%s2273_s2] sm:$0xff] }
 0x112   :  { %309 = vst [vmem:[%s2280_s9] sm:$0xff] %v307_v15  ;;  %v306_v18 = vmax.f32 %v301_v11, %v302_v16  ;;  %v321_v20 = vsel %vm318_vm1, %v307_v15, inf  ;;  %v334_v24 = vsel %vm318_vm1, %v307_v15, -inf  ;;  %v1229_v11 = vpack.c.bf16 %v535_v9, %v534_v8 }
 0x113   :  { %1228 = vmatprep.subr.bf16.mxu0 %v1227_v7 }
 0x114   :  { %v308_v19 = vmax.f32 %v304_v17, %v306_v18  ;;  %1230 = vmatpush3.bf16.msra.mxu0 %v1229_v11  ;;  %v536_v17 = vld [vmem:[%s2273_s2 + $0x10] sm:$0xff]  ;;  %v537_v18 = vld [vmem:[%s2273_s2 + $0x18] sm:$0xff] }
 0x116   :  { %310 = vst [vmem:[%s2280_s9 + $0x8] sm:$0xff] %v308_v19  ;;  %v322_v21 = vsel %vm318_vm1, %v308_v19, inf  ;;  %v335_v23 = vsel %vm318_vm1, %v308_v19, -inf }
 0x117   :  { %v323_v22 = vmin.f32 %v321_v20, %v322_v21  ;;  %v336_v25 = vmax.f32 %v334_v24, %v335_v23  ;;  %v1233_v20 = vpack.c.bf16 %v537_v18, %v536_v17  ;;  %v555_v23 = vld [vmem:[%s2273_s2 + $0xa8] sm:$0xff] }
 0x119   :  { %324 = vmin.xlane.f32.xlu0 %v323_v22  ;;  %v554_v22 = vld [vmem:[%s2273_s2 + $0xa0] sm:$0xff] }
 0x11a   :  { %v1235_v24 = vpack.c.bf16 %v555_v23, %v554_v22 }
 0x11d   :  { %337 = vmax.xlane.f32.xlu0 %v336_v25  ;;  %v538_v25 = vld [vmem:[%s2273_s2 + $0x20] sm:$0xff] }
 0x1a6   :  { %v325_v26 = vpop.xlane.xlu0 %324 }
 0x1a7   :  { %v326_v27 = vrot.slane %v325_v26, 4 }
 0x1a9   :  { %v327_v28 = vmin.f32 %v325_v26, %v326_v27  ;;  %v539_v26 = vld [vmem:[%s2273_s2 + $0x28] sm:$0xff] }
 0x1aa   :  { %v338_v29 = vpop.xlane.xlu0 %337 }
 0x1ab   :  { %v328_v30 = vrot.slane %v327_v28, 2  ;;  %v339_v31 = vrot.slane %v338_v29, 4 }
 0x1ad   :  { %v340_v32 = vmax.f32 %v338_v29, %v339_v31  ;;  %v329_v33 = vmin.f32 %v327_v28, %v328_v30  ;;  %v1237_v28 = vpack.c.bf16 %v539_v26, %v538_v25  ;;  %v556_v29 = vld [vmem:[%s2273_s2 + $0xb0] sm:$0xff]  ;;  %v557_v30 = vld [vmem:[%s2273_s2 + $0xb8] sm:$0xff] }
 0x1ae   :  { %v1239_v31 = vpack.c.bf16 %v557_v30, %v556_v29 }
 0x1af   :  { %v341_v34 = vrot.slane %v340_v32, 2  ;;  %v330_v35 = vrot.slane %v329_v33, 1 }
 0x1b1   :  { %v331_v36 = vmin.f32 %v329_v33, %v330_v35  ;;  %v342_v37 = vmax.f32 %v340_v32, %v341_v34  ;;  %v540_v32 = vld [vmem:[%s2273_s2 + $0x30] sm:$0xff]  ;;  %v541_v33 = vld [vmem:[%s2273_s2 + $0x38] sm:$0xff] }
 0x1b2   :  { %v1241_v35 = vpack.c.bf16 %v541_v33, %v540_v32  ;;  %v1004_v32 = vld [vmem:[%s2274_s3] ss:$0 sm:$0xff] }
 0x1b3   :  { %1307 = vpush %v331_v36  ;;  %v343_v38 = vrot.slane %v342_v37, 1  ;;  %v558_v36 = vld [vmem:[%s2273_s2 + $0xc0] sm:$0xff] }
 0x1b5   :  { %v344_v39 = vmax.f32 %v342_v37, %v343_v38  ;;  %v559_v37 = vld [vmem:[%s2273_s2 + $0xc8] sm:$0xff] }
 0x1b6   :  { %v1243_v38 = vpack.c.bf16 %v559_v37, %v558_v36 }
 0x1b7   :  { %1309 = vpush %v344_v39  ;;  %v542_v39 = vld [vmem:[%s2273_s2 + $0x40] sm:$0xff] }
 0x1e4   :  { %s1308_s8 = spop %1307 }
 0x1e5   :  { %v333_v40 = vstv %s1308_s8 }
 0x1e6   :  { %v347_v47 = vsub.f32 %v307_v15, %v333_v40  ;;  %v348_v48 = vsub.f32 %v308_v19, %v333_v40  ;;  %v553_v15 = vld [vmem:[%s2273_s2 + $0x98] sm:$0xff] }
 0x1e7   :  { %v1231_v16 = vpack.c.bf16 %v553_v15, %v552_v13 }
 0x1e8   :  { %s1310_s9 = spop %1309 }
 0x1e9   :  { %v346_v41 = vstv %s1310_s9  ;;  %1232 = vmatprep.subr.bf16.mxu0 %v1231_v16 }
 0x1ea   :  { %v349_v42 = vsub.f32 %v346_v41, %v333_v40  ;;  %1234 = vmatpush3.bf16.msra.mxu0 %v1233_v20  ;;  %v543_v40 = vld [vmem:[%s2273_s2 + $0x48] sm:$0xff] }
 0x1eb   :  { %1236 = vmatprep.subr.bf16.mxu0 %v1235_v24 }
 0x1ec   :  { %1336 = vrcp.f32 %v349_v42  ;;  %v1245_v42 = vpack.c.bf16 %v543_v40, %v542_v39 }
 0x1ee   :  { %1238 = vmatpush3.bf16.msra.mxu0 %v1237_v28 }
 0x1ef   :  { %1240 = vmatprep.subr.bf16.mxu0 %v1239_v31 }
 0x1f2   :  { %1242 = vmatpush3.bf16.msra.mxu0 %v1241_v35 }
 0x1f3   :  { %1244 = vmatprep.subr.bf16.mxu0 %v1243_v38 }
 0x1f6   :  { %v1337_v50 = vpop.eup %1336  ;;  %1246 = vmatpush3.bf16.msra.mxu0 %v1245_v42  ;;  %v688_v42 = vld [vmem:[%s2275_s4 + $0x8] sm:$0xff] }
 0x1f7   :  { %v352_v51 = vmul.f32 %v1337_v50, %v348_v48  ;;  %v351_v52 = vmul.f32 %v1337_v50, %v347_v47  ;;  %v545_v47 = vld [vmem:[%s2273_s2 + $0x58] sm:$0xff]  ;;  %1248 = vmatprep.subr.bf16.mxu0 %v1247_v45  ;;  %v562_v50 = vld [vmem:[%s2273_s2 + $0xe0] sm:$0xff] }
 0x1f9   :  { %354 = vst [vmem:[%s2281_s10 + $0x8] sm:$0xff] %v352_v51  ;;  %v364_v53 = vrot.slane %v351_v52, %v363_v49  ;;  %353 = vst [vmem:[%s2281_s10] sm:$0xff] %v351_v52  ;;  %v444_v54 = vcombine.high %v352_v51, %v352_v51  ;;  %v426_v56 = vrot.slane %v352_v51, %v363_v49  ;;  %s1486_s10 = smov 32  }
 0x1fa   :  { %356 = vst.msk [vmem:[#allocation2] sm:$0x1] %vm355_vm2, %v351_v52  ;;  %418 = vst.msk [vmem:[#allocation2 + $0x2] sm:$0x1] %vm355_vm2, %v352_v51  ;;  %v385_v63 = vcombine.high %v351_v52, %v351_v52  ;;  %v563_v51 = vld [vmem:[%s2273_s2 + $0xe8] sm:$0xff]  ;;  %v546_v52 = vld [vmem:[%s2273_s2 + $0x60] sm:$0xff] }
 0x1fb   :  { %473 = vrot.lane.b32.xlu1 %v364_v53, %s1483_s28  ;;  %v451_v55 = vrot.slane %v444_v54, %v363_v49  ;;  %v365_v57 = vrot.slane %v364_v53, 7  ;;  %v1885_v58 = vcombine.high %v364_v53, %v364_v53  ;;  %v433_v60 = vcombine.high %v426_v56, %v426_v56  ;;  %v547_v54 = vld [vmem:[%s2273_s2 + $0x68] sm:$0xff] }
 0x1fc   :  { %v1900_v1 = vrot.slane %v385_v63, %v363_v49  ;;  %v427_v3 = vrot.slane %v426_v56, 7  ;;  %v1249_v49 = vpack.c.bf16 %v545_v47, %v544_v46  ;;  %v1251_v53 = vpack.c.bf16 %v563_v51, %v562_v50  ;;  %v690_v46 = vld [vmem:[%s2275_s4 + $0x18] sm:$0xff]  ;;  %v693_v51 = vld [vmem:[%s2275_s4 + $0x30] sm:$0xff] }
 0x1fd   :  { %452 = vrot.lane.b32.xlu0 %v451_v55, %s1484_s29  ;;  %v1889_v59 = vrot.slane %v365_v57, 2  ;;  %v462_v61 = vcombine.high %v451_v55, %v451_v55  ;;  %v438_v62 = vrot.slane %v433_v60, 7  ;;  %v456_v2 = vrot.slane %v451_v55, 7 }
 0x1fe   :  { %v1920_v10 = vrot.slane %v427_v3, 2  ;;  %v1939_v19 = vcombine.high %v1900_v1, %v1900_v1  ;;  %v378_v27 = vrot.slane %v1885_v58, 7  ;;  %v398_v41 = vrot.slane %v1900_v1, 7  ;;  %1250 = vmatpush3.bf16.msra.mxu0 %v1249_v49  ;;  %v692_v49 = vld [vmem:[%s2275_s4 + $0x28] sm:$0xff] }
 0x1ff   :  { %503 = vrot.lane.b32.xlu1 %v426_v56, %s1483_s28  ;;  %v439_v0 = vrot.slane %v438_v62, 2  ;;  %v457_v4 = vrot.slane %v456_v2, 2  ;;  %v467_v12 = vrot.slane %v462_v61, 7  ;;  %v565_v56 = vld [vmem:[%s2273_s2 + $0xf8] sm:$0xff]  ;;  %v1253_v57 = vpack.c.bf16 %v547_v54, %v546_v52  ;;  %1252 = vmatprep.subr.bf16.mxu0 %v1251_v53  ;;  %v695_v54 = vld [vmem:[%s2275_s4 + $0x40] sm:$0xff] }
 0x200   :  { %v379_v34 = vrot.slane %v378_v27, 2  ;;  %v399_v48 = vrot.slane %v398_v41, 2  ;;  %v411_v62 = vrot.slane %v1939_v19, 7  ;;  %v687_v41 = vld [vmem:[%s2275_s4] sm:$0xff]  ;;  %v1263_v47 = vpack.c.bf16 %v690_v46, %v689_v43  ;;  %v694_v52 = vld [vmem:[%s2275_s4 + $0x38] sm:$0xff]  ;;  %v821_v46 = vld [vmem:[%s2277_s6 + $0x48] sm:$0xff] }
 0x201   :  { %517 = vrot.lane.b32.xlu0 %v451_v55, %s1485_s30  ;;  %v468_v21 = vrot.slane %v467_v12, 2  ;;  %v564_v55 = vld [vmem:[%s2273_s2 + $0xf0] sm:$0xff]  ;;  %v1260_v45 = vpack.c.bf16 %v688_v42, %v687_v41  ;;  %v1269_v53 = vpack.c.bf16 %v694_v52, %v693_v51  ;;  %v819_v42 = vld [vmem:[%s2277_s6 + $0x38] sm:$0xff]  ;;  %v824_v51 = vld [vmem:[%s2277_s6 + $0x60] sm:$0xff] }
 0x202   :  { %1254 = vmatpush3.bf16.msra.mxu0 %v1253_v57  ;;  %v697_v57 = vld [vmem:[%s2275_s4 + $0x50] sm:$0xff]  ;;  %v825_v52 = vld [vmem:[%s2277_s6 + $0x68] sm:$0xff] }
 0x203   :  { %373 = vrot.lane.b32.xlu1 %v1885_v58, %s1486_s10  ;;  %1261 = vmatpush3.bf16.msra.mxu1 %v1260_v45  ;;  %v818_v41 = vld [vmem:[%s2277_s6 + $0x30] sm:$0xff]  ;;  %v820_v45 = vld [vmem:[%s2277_s6 + $0x40] sm:$0xff] }
 0x204   :  { %1262 = vmatprep.subr.bf16.mxu1 %v1490_v44  ;;  %v1293_v43 = vpack.c.bf16 %v819_v42, %v818_v41 }
 0x205   :  { %367 = vrot.lane.b32.xlu0 %v1889_v59, %s1487_s0 }
 0x207   :  { %434 = vrot.lane.b32.xlu1 %v433_v60, %s1486_s10  ;;  %1264 = vmatpush3.bf16.msra.mxu1 %v1263_v47  ;;  %v1296_v47 = vpack.c.bf16 %v821_v46, %v820_v45 }
 0x208   :  { %1265 = vmatprep.subr.bf16.mxu1 %v1490_v44 }
 0x209   :  { %463 = vrot.lane.b32.xlu0 %v462_v61, %s1488_s17 }
 0x20b   :  { %479 = vrot.lane.b32.xlu1 %v1885_v58, %s1487_s0  ;;  %v1255_v58 = vpack.c.bf16 %v565_v56, %v564_v55  ;;  %v696_v55 = vld [vmem:[%s2275_s4 + $0x48] sm:$0xff] }
 0x20c   :  { %v1272_v56 = vpack.c.bf16 %v696_v55, %v695_v54  ;;  %v826_v54 = vld [vmem:[%s2277_s6 + $0x70] sm:$0xff]  ;;  %v827_v55 = vld [vmem:[%s2277_s6 + $0x78] sm:$0xff] }
 0x20d   :  { %525 = vrot.lane.b32.xlu0 %v462_v61, %s1489_s18  ;;  %v549_v61 = vld [vmem:[%s2273_s2 + $0x78] sm:$0xff]  ;;  %1256 = vmatprep.subr.bf16.mxu0 %v1255_v58 }
 0x20e   :  { %v698_v58 = vld [vmem:[%s2275_s4 + $0x58] sm:$0xff] }
 0x20f   :  { %509 = vrot.lane.b32.xlu1 %v433_v60, %s1487_s0  ;;  %v548_v60 = vld [vmem:[%s2273_s2 + $0x70] sm:$0xff] }
 0x210   :  { %v1257_v63 = vpack.c.bf16 %v549_v61, %v548_v60  ;;  %v1275_v60 = vpack.c.bf16 %v698_v58, %v697_v57  ;;  %v699_v61 = vld [vmem:[%s2275_s4 + $0x60] sm:$0xff] }
 0x211   :  { %440 = vrot.lane.b32.xlu0 %v439_v0, %s1485_s30 }
 0x212   :  { %1258 = vmatpush3.bf16.msra.mxu0 %v1257_v63  ;;  %v1492_v63 = vmov 0.0  }
 0x213   :  { %393 = vrot.lane.b32.xlu1 %v1900_v1, %s1484_s29  ;;  %1283 = vmatprep.subr.bf16.mxu0 %v1490_v44 }
 0x214   :  { %1109 = vmatprep.mubr.msk.f32.mxu1 %vm1491_vm12, %v1492_v63 }
 0x215   :  { %513 = vrot.lane.b32.xlu0 %v439_v0, %s1486_s10  ;;  %v412_v0 = vrot.slane %v411_v62, 2  ;;  %v700_v62 = vld [vmem:[%s2275_s4 + $0x68] sm:$0xff] }
 0x217   :  { %487 = vrot.lane.b32.xlu1 %v1900_v1, %s1485_s30 }
 0x219   :  { %458 = vrot.lane.b32.xlu0 %v457_v4, %s1489_s18 }
 0x21b   :  { %429 = vrot.lane.b32.xlu1 %v1920_v10, %s1487_s0 }
 0x21d   :  { %521 = vrot.lane.b32.xlu0 %v457_v4, %s1484_s29 }
 0x21f   :  { %406 = vrot.lane.b32.xlu1 %v1939_v19, %s1488_s17 }
 0x221   :  { %469 = vrot.lane.b32.xlu0 %v468_v21, %s1483_s28 }
 0x223   :  { %495 = vrot.lane.b32.xlu1 %v1939_v19, %s1489_s18 }
 0x225   :  { %529 = vrot.lane.b32.xlu0 %v468_v21, %s1488_s17 }
 0x227   :  { %380 = vrot.lane.b32.xlu1 %v379_v34, %s1485_s30 }
 0x22b   :  { %483 = vrot.lane.b32.xlu1 %v379_v34, %s1486_s10 }
 0x22f   :  { %400 = vrot.lane.b32.xlu1 %v399_v48, %s1489_s18 }
 0x233   :  { %491 = vrot.lane.b32.xlu1 %v399_v48, %s1484_s29  ;;  %v691_v48 = vld [vmem:[%s2275_s4 + $0x20] sm:$0xff] }
 0x234   :  { %v1266_v50 = vpack.c.bf16 %v692_v49, %v691_v48  ;;  %v822_v48 = vld [vmem:[%s2277_s6 + $0x50] sm:$0xff]  ;;  %v823_v49 = vld [vmem:[%s2277_s6 + $0x58] sm:$0xff] }
 0x236   :  { %1267 = vmatpush3.bf16.msra.mxu1 %v1266_v50  ;;  %v1299_v50 = vpack.c.bf16 %v823_v49, %v822_v48 }
 0x237   :  { %413 = vrot.lane.b32.xlu1 %v412_v0, %s1483_s28  ;;  %1268 = vmatprep.subr.bf16.mxu1 %v1490_v44 }
 0x23a   :  { %1270 = vmatpush3.bf16.msra.mxu1 %v1269_v53  ;;  %v1302_v53 = vpack.c.bf16 %v825_v52, %v824_v51 }
 0x23b   :  { %499 = vrot.lane.b32.xlu1 %v412_v0, %s1488_s17  ;;  %1271 = vmatprep.subr.bf16.mxu1 %v1490_v44  ;;  %v1278_v0 = vpack.c.bf16 %v700_v62, %v699_v61  ;;  %s1493_s17 = smov [#allocation4]  }
 0x23c   :  { %s928_s25 = sshll.u32 %s1493_s17, 4  ;;  %s929_s25 = int_to_ptr.vmem [resolvable:$true] %s928_s25 }
 0x23d   :  { %s1342_s27 = scalar_lea.vmem %s929_s25, 32  ;;  %p1347_p1 = scmp.lt.s32.totalorder %s929_s25, %s929_s25 }
 0x23e   :  { %1273 = vmatpush3.bf16.msra.mxu1 %v1272_v56  ;;  %v1305_v56 = vpack.c.bf16 %v827_v55, %v826_v54  ;;  %p1343_p0 = scmp.ne.s32.totalorder %s929_s25, %s1342_s27  ;;  %p1348_p2 = scmp.lt.s32.totalorder %s1342_s27, %s1342_s27 }
 0x23f   :  { %1274 = vmatprep.subr.bf16.mxu1 %v1490_v44 }
 0x240   :  { %p1349_p3 = por %p1348_p2, %p1347_p1 }
 0x242   :  { %1276 = vmatpush3.bf16.msra.mxu1 %v1275_v60  ;;  %p1350_p4 = pnand %p1349_p3, %p1343_p0 }
 0x243   :  { %1277 = vmatprep.subr.bf16.mxu1 %v1490_v44 }
 0x246   :  { %1279 = vmatpush3.bf16.msra.mxu1 %v1278_v0 }
 0x247   :  { %1280 = vmatprep.subr.bf16.mxu1 %v1490_v44 }
 0x26d   :  { %v474_v1 = vpop.permute.xlu1 %473 }
 0x26e   :  { %476 = vst.msk [vmem:[#allocation2 + $0x1] sm:$0x1] %vm355_vm2, %v474_v1  ;;  %v701_v1 = vld [vmem:[%s2275_s4 + $0x70] sm:$0xff] }
 0x26f   :  { %478 = vst.msk [vmem:[#allocation2 + $0x1] sm:$0x1] %vm370_vm3, %v1889_v59  ;;  %v453_v2 = vpop.permute.xlu0 %452 }
 0x271   :  { %v504_v3 = vpop.permute.xlu1 %503 }
 0x272   :  { %506 = vst.msk [vmem:[#allocation2 + $0x3] sm:$0x1] %vm355_vm2, %v504_v3 }
 0x273   :  { %508 = vst.msk [vmem:[#allocation2 + $0x3] sm:$0x1] %vm370_vm3, %v1920_v10  ;;  %v518_v4 = vpop.permute.xlu0 %517 }
 0x275   :  { %v374_v5 = vpop.permute.xlu1 %373 }
 0x277   :  { %v368_v6 = vpop.permute.xlu0 %367 }
 0x278   :  { %371 = vst.msk [vmem:[#allocation2] sm:$0x1] %vm370_vm3, %v368_v6 }
 0x279   :  { %v435_v7 = vpop.permute.xlu1 %434  ;;  %377 = vst.msk [vmem:[#allocation2] sm:$0x1] %vm376_vm4, %v374_v5 }
 0x27b   :  { %v464_v8 = vpop.permute.xlu0 %463 }
 0x27d   :  { %v480_v9 = vpop.permute.xlu1 %479 }
 0x27e   :  { %482 = vst.msk [vmem:[#allocation2 + $0x1] sm:$0x1] %vm376_vm4, %v480_v9 }
 0x27f   :  { %v526_v59 = vpop.permute.xlu0 %525 }
 0x281   :  { %v510_v11 = vpop.permute.xlu1 %509 }
 0x282   :  { %512 = vst.msk [vmem:[#allocation2 + $0x3] sm:$0x1] %vm376_vm4, %v510_v11 }
 0x283   :  { %v441_v12 = vpop.permute.xlu0 %440 }
 0x285   :  { %v394_v13 = vpop.permute.xlu1 %393 }
 0x287   :  { %v514_v10 = vpop.permute.xlu0 %513 }
 0x288   :  { %516 = vst.msk [vmem:[#allocation2 + $0x3] sm:$0x1] %vm383_vm5, %v514_v10 }
 0x289   :  { %v488_v15 = vpop.permute.xlu1 %487  ;;  %520 = vst.msk [vmem:[#allocation2 + $0x3] sm:$0x1] %vm396_vm6, %v518_v4 }
 0x28b   :  { %v459_v16 = vpop.permute.xlu0 %458 }
 0x28d   :  { %v430_v17 = vpop.permute.xlu1 %429 }
 0x28e   :  { %432 = vst.msk [vmem:[#allocation2 + $0x2] sm:$0x1] %vm370_vm3, %v430_v17 }
 0x28f   :  { %437 = vst.msk [vmem:[#allocation2 + $0x2] sm:$0x1] %vm376_vm4, %v435_v7  ;;  %v522_v18 = vpop.permute.xlu0 %521 }
 0x290   :  { %443 = vst.msk [vmem:[#allocation2 + $0x2] sm:$0x1] %vm383_vm5, %v441_v12 }
 0x291   :  { %524 = vst.msk [vmem:[#allocation2 + $0x3] sm:$0x1] %vm403_vm7, %v522_v18  ;;  %v407_v19 = vpop.permute.xlu1 %406 }
 0x292   :  { %455 = vst.msk [vmem:[#allocation2 + $0x2] sm:$0x1] %vm396_vm6, %v453_v2  ;;  %v702_v2 = vld [vmem:[%s2275_s4 + $0x78] sm:$0xff] }
 0x293   :  { %528 = vst.msk [vmem:[#allocation2 + $0x3] sm:$0x1] %vm409_vm8, %v526_v59  ;;  %v470_v20 = vpop.permute.xlu0 %469  ;;  %v1281_v3 = vpack.c.bf16 %v702_v2, %v701_v1 }
 0x294   :  { %461 = vst.msk [vmem:[#allocation2 + $0x2] sm:$0x1] %vm403_vm7, %v459_v16 }
 0x295   :  { %466 = vst.msk [vmem:[#allocation2 + $0x2] sm:$0x1] %vm409_vm8, %v464_v8  ;;  %v496_v21 = vpop.permute.xlu1 %495  ;;  %1282 = vmatpush3.bf16.msra.mxu1 %v1281_v3 }
 0x296   :  { %472 = vst.msk [vmem:[#allocation2 + $0x2] sm:$0x1] %vm416_vm9, %v470_v20 }
 0x297   :  { %v530_v22 = vpop.permute.xlu0 %529 }
 0x298   :  { %532 = vst.msk [vmem:[#allocation2 + $0x3] sm:$0x1] %vm416_vm9, %v530_v22 }
 0x299   :  { %v381_v23 = vpop.permute.xlu1 %380 }
 0x29a   :  { %384 = vst.msk [vmem:[#allocation2] sm:$0x1] %vm383_vm5, %v381_v23 }
 0x29b   :  { %397 = vst.msk [vmem:[#allocation2] sm:$0x1] %vm396_vm6, %v394_v13 }
 0x29d   :  { %v484_v24 = vpop.permute.xlu1 %483 }
 0x29e   :  { %486 = vst.msk [vmem:[#allocation2 + $0x1] sm:$0x1] %vm383_vm5, %v484_v24  ;;  %v1006_v24 = vld [vmem:[%s2276_s5] ss:$0 sm:$0xff] }
 0x29f   :  { %490 = vst.msk [vmem:[#allocation2 + $0x1] sm:$0x1] %vm396_vm6, %v488_v15 }
 0x2a1   :  { %v401_v25 = vpop.permute.xlu1 %400 }
 0x2a2   :  { %404 = vst.msk [vmem:[#allocation2] sm:$0x1] %vm403_vm7, %v401_v25 }
 0x2a3   :  { %410 = vst.msk [vmem:[#allocation2] sm:$0x1] %vm409_vm8, %v407_v19 }
 0x2a5   :  { %v492_v26 = vpop.permute.xlu1 %491 }
 0x2a6   :  { %494 = vst.msk [vmem:[#allocation2 + $0x1] sm:$0x1] %vm403_vm7, %v492_v26 }
 0x2a7   :  { %498 = vst.msk [vmem:[#allocation2 + $0x1] sm:$0x1] %vm409_vm8, %v496_v21 }
 0x2a9   :  { %v414_v27 = vpop.permute.xlu1 %413 }
 0x2aa   :  { %417 = vst.msk [vmem:[#allocation2] sm:$0x1] %vm416_vm9, %v414_v27 }
 0x2ad   :  { %v500_v28 = vpop.permute.xlu1 %499 }
 0x2ae   :  { %502 = vst.msk [vmem:[#allocation2 + $0x1] sm:$0x1] %vm416_vm9, %v500_v28 }
 0x2b5   :  { %v1005_v29 = vld.sshfl [vmem:[#allocation2] sm:$0x33 pattern:$0x76325410] }
 0x2b6   :  { %v581_v30 = vcombine.high %v1005_v29, %v1005_v29 }
 0x2b8   :  { %648 = vmatprep.mubr.f32.mxu0 %v581_v30 }
 0x2b9   :  { %649 = vmatmul.mubr.f32.vlgmr.msra.gmra.mrb[4].mxu0 %v1005_v29 }
 0x2ba   :  { %1144 = vmatprep.mubr.msk.f32.mxu0 %vm1491_vm12, %v1492_v63 }
 0x38c   :  { %v1040_v31 = vpop.f32.mrb[4].mxu0 }
 0x38d   :  { %v1041_v33 = vpop.f32.mrb[5].mxu0 }
 0x38e   :  { %v1042_v34 = vadd.f32 %v1041_v33, %v1040_v31  ;;  %v812_v33 = vld [vmem:[%s2277_s6] sm:$0xff] }
 0x390   :  { %v651_v35 = vadd.f32 %v1042_v34, %v1004_v32  ;;  %v814_v34 = vld [vmem:[%s2277_s6 + $0x10] sm:$0xff] }
 0x392   :  { %v2064_v36 = vmax.f32 %v651_v35, 0.0  ;;  %v1284_v35 = vpack.c.bf16 %v813_v14, %v812_v33 }
 0x394   :  { %655 = vst [vmem:[#allocation4] sm:$0x3] %v2064_v36  ;;  %v670_v37 = vsel %vm656_vm10, %v2064_v36, -inf  ;;  %v657_v38 = vsel %vm656_vm10, %v2064_v36, inf  ;;  %1285 = vmatpush3.bf16.msra.mxu0 %v1284_v35 }
 0x395   :  { %v671_v39 = vsel %vm658_vm11, %v670_v37, -inf  ;;  %v659_v40 = vsel %vm658_vm11, %v657_v38, inf  ;;  %1286 = vmatprep.subr.bf16.mxu0 %v1490_v44  ;;  %v816_v38 = vld [vmem:[%s2277_s6 + $0x20] sm:$0xff] }
 0x396   :  { %672 = vmax.xlane.f32.xlu0 %v671_v39  ;;  %660 = vmin.xlane.f32.xlu1 %v659_v40  ;;  %v817_v39 = vld [vmem:[%s2277_s6 + $0x28] sm:$0xff] }
 0x397   :  { %v1290_v40 = vpack.c.bf16 %v817_v39, %v816_v38 }
 0x423   :  { %v673_v4 = vpop.xlane.xlu0 %672  ;;  %v661_v5 = vpop.xlane.xlu1 %660 }
 0x424   :  { %v674_v6 = vrot.slane %v673_v4, 4  ;;  %v662_v7 = vrot.slane %v661_v5, 4 }
 0x426   :  { %v675_v8 = vmax.f32 %v673_v4, %v674_v6  ;;  %v663_v9 = vmin.f32 %v661_v5, %v662_v7 }
 0x428   :  { %v676_v59 = vrot.slane %v675_v8, 2  ;;  %v664_v11 = vrot.slane %v663_v9, 2 }
 0x42a   :  { %v665_v12 = vmin.f32 %v663_v9, %v664_v11  ;;  %v677_v13 = vmax.f32 %v675_v8, %v676_v59 }
 0x42c   :  { %v666_v10 = vrot.slane %v665_v12, 1  ;;  %v678_v15 = vrot.slane %v677_v13, 1 }
 0x42e   :  { %v667_v16 = vmin.f32 %v665_v12, %v666_v10  ;;  %v679_v17 = vmax.f32 %v677_v13, %v678_v15 }
 0x430   :  { %1311 = vpush %v667_v16 }
 0x431   :  { %1313 = vpush %v679_v17 }
 0x461   :  { %s1312_s4 = spop %1311 }
 0x462   :  { %v669_v18 = vstv %s1312_s4  ;;  %s1314_s20 = spop %1313 }
 0x463   :  { %v681_v19 = vstv %s1314_s20  ;;  %v682_v21 = vsub.f32 %v2064_v36, %v669_v18  ;;  %v815_v36 = vld [vmem:[%s2277_s6 + $0x18] sm:$0xff] }
 0x464   :  { %v683_v20 = vsub.f32 %v681_v19, %v669_v18  ;;  %v1287_v37 = vpack.c.bf16 %v815_v36, %v814_v34 }
 0x466   :  { %1338 = vrcp.f32 %v683_v20  ;;  %1288 = vmatpush3.bf16.msra.mxu0 %v1287_v37 }
 0x467   :  { %1289 = vmatprep.subr.bf16.mxu0 %v1490_v44 }
 0x46a   :  { %1291 = vmatpush3.bf16.msra.mxu0 %v1290_v40 }
 0x46b   :  { %1292 = vmatprep.subr.bf16.mxu0 %v1490_v44 }
 0x46e   :  { %1294 = vmatpush3.bf16.msra.mxu0 %v1293_v43 }
 0x46f   :  { %1295 = vmatprep.subr.bf16.mxu0 %v1490_v44 }
 0x470   :  { %v1339_v22 = vpop.eup %1338 }
 0x471   :  { %v685_v23 = vmul.f32 %v1339_v22, %v682_v21 }
 0x472   :  { %1297 = vmatpush3.bf16.msra.mxu0 %v1296_v47 }
 0x473   :  { %1110 = vmatmul.mubr.f32.vlgmr.msra.gmra.mrb[4].mxu1 %v685_v23  ;;  %686 = vst [vmem:[#allocation6] sm:$0x3] %v685_v23  ;;  %1298 = vmatprep.subr.bf16.mxu0 %v1490_v44 }
 0x476   :  { %1300 = vmatpush3.bf16.msra.mxu0 %v1299_v50 }
 0x477   :  { %1301 = vmatprep.subr.bf16.mxu0 %v1490_v44 }
 0x47a   :  { %1303 = vmatpush3.bf16.msra.mxu0 %v1302_v53 }
 0x47b   :  { %1304 = vmatprep.subr.bf16.mxu0 %v1490_v44 }
 0x47e   :  { %1306 = vmatpush3.bf16.msra.mxu0 %v1305_v56 }
 0x546   :  { %v776_v25 = vpop.f32.mrb[4].mxu1 }
 0x547   :  { %v777_v26 = vadd.f32 %v1006_v24, %v776_v25  ;;  %v1111_v27 = vpop.f32.mrb[5].mxu1 }
 0x549   :  { %v2133_v28 = vmax.f32 %v777_v26, 0.0 }
 0x54b   :  { %781 = vst [vmem:[#allocation7] sm:$0x3] %v2133_v28  ;;  %v795_v29 = vsel %vm782_vm13, %v2133_v28, -inf  ;;  %v783_v30 = vsel %vm782_vm13, %v2133_v28, inf }
 0x54c   :  { %v796_v31 = vsel %vm658_vm11, %v795_v29, -inf  ;;  %v784_v32 = vsel %vm658_vm11, %v783_v30, inf }
 0x54d   :  { %797 = vmax.xlane.f32.xlu1 %v796_v31  ;;  %785 = vmin.xlane.f32.xlu0 %v784_v32 }
 0x5da   :  { %v798_v57 = vpop.xlane.xlu1 %797  ;;  %v786_v58 = vpop.xlane.xlu0 %785 }
 0x5db   :  { %v799_v60 = vrot.slane %v798_v57, 4  ;;  %v787_v61 = vrot.slane %v786_v58, 4 }
 0x5dd   :  { %v800_v62 = vmax.f32 %v798_v57, %v799_v60  ;;  %v788_v63 = vmin.f32 %v786_v58, %v787_v61 }
 0x5df   :  { %v801_v0 = vrot.slane %v800_v62, 2  ;;  %v789_v1 = vrot.slane %v788_v63, 2 }
 0x5e1   :  { %v802_v2 = vmax.f32 %v800_v62, %v801_v0  ;;  %v790_v3 = vmin.f32 %v788_v63, %v789_v1 }
 0x5e3   :  { %v791_v4 = vrot.slane %v790_v3, 1  ;;  %v803_v5 = vrot.slane %v802_v2, 1 }
 0x5e5   :  { %v792_v6 = vmin.f32 %v790_v3, %v791_v4  ;;  %v804_v7 = vmax.f32 %v802_v2, %v803_v5 }
 0x5e7   :  { %1315 = vpush %v792_v6 }
 0x5e8   :  { %1317 = vpush %v804_v7 }
 0x618   :  { %s1316_s6 = spop %1315 }
 0x619   :  { %v794_v8 = vstv %s1316_s6  ;;  %s1318_s29 = spop %1317 }
 0x61a   :  { %v806_v44 = vstv %s1318_s29  ;;  %v807_v59 = vsub.f32 %v2133_v28, %v794_v8 }
 0x61b   :  { %v808_v9 = vsub.f32 %v806_v44, %v794_v8 }
 0x61d   :  { %1340 = vrcp.f32 %v808_v9 }
 0x627   :  { %v1341_v11 = vpop.eup %1340 }
 0x628   :  { %v810_v12 = vmul.f32 %v1341_v11, %v807_v59 }
 0x62a   :  { %1145 = vmatmul.mubr.f32.vlgmr.msra.gmra.mrb[6].mxu0 %v810_v12  ;;  %811 = vst [vmem:[#allocation9] sm:$0x3] %v810_v12 }
 0x62b   :  { %1353 = shalt.err (!%p1350_p4)
}
 0x62c   :  { %s1354_s19 = scalar_lea.hbm %s2283_s12, 32 }
 0x62d   :  { %p1355_p5 = scmp.ne.s32.totalorder %s2283_s12, %s1354_s19  ;;  %p1358_p6 = scmp.lt.u32.totalorder %s1354_s19, %s2283_s12 }
 0x62f   :  { %p1360_p7 = pnand %p1358_p6, %p1355_p5 }
 0x631   :  { %1363 = shalt.err (!%p1360_p7)
}
 0x632   :  { %931 = dma.vmem_to_hbm [thread:$0]  %s929_s25, 32, %s2283_s12, [#allocation5]  }
 0x633   :  { %s1364_s22 = scalar_lea.vmem %s949_s1, 32  ;;  %p1369_p9 = scmp.lt.s32.totalorder %s949_s1, %s949_s1 }
 0x634   :  { %p1365_p8 = scmp.ne.s32.totalorder %s949_s1, %s1364_s22  ;;  %p1370_p10 = scmp.lt.s32.totalorder %s1364_s22, %s1364_s22 }
 0x636   :  { %p1371_p11 = por %p1370_p10, %p1369_p9 }
 0x638   :  { %p1372_p12 = pnand %p1371_p11, %p1365_p8 }
 0x63a   :  { %1375 = shalt.err (!%p1372_p12)
}
 0x63b   :  { %s1376_s18 = scalar_lea.hbm %s2285_s14, 32 }
 0x63c   :  { %p1377_p13 = scmp.ne.s32.totalorder %s2285_s14, %s1376_s18  ;;  %p1380_p0 = scmp.lt.u32.totalorder %s1376_s18, %s2285_s14 }
 0x63e   :  { %p1382_p1 = pnand %p1380_p0, %p1377_p13 }
 0x640   :  { %1385 = shalt.err (!%p1382_p1)
}
 0x641   :  { %951 = dma.vmem_to_hbm [thread:$0]  %s949_s1, 32, %s2285_s14, [#allocation8]  }
 0x642   :  { %s1495_s29 = smov [#allocation2]   ;;  %s1496_s25 = smov [#allocation6]  }
 0x643   :  { %s918_s17 = sshll.u32 %s1495_s29, 4  ;;  %s938_s26 = sshll.u32 %s1496_s25, 4  ;;  %s919_s17 = int_to_ptr.vmem [resolvable:$true] %s918_s17  ;;  %s939_s26 = int_to_ptr.vmem [resolvable:$true] %s938_s26 }
 0x644   :  { %s1386_s27 = scalar_lea.vmem %s919_s17, 64  ;;  %p1391_p3 = scmp.lt.s32.totalorder %s919_s17, %s919_s17 }
 0x645   :  { %p1387_p2 = scmp.ne.s32.totalorder %s919_s17, %s1386_s27  ;;  %p1392_p4 = scmp.lt.s32.totalorder %s1386_s27, %s1386_s27 }
 0x647   :  { %p1393_p5 = por %p1392_p4, %p1391_p3 }
 0x649   :  { %p1394_p6 = pnand %p1393_p5, %p1387_p2 }
 0x64b   :  { %1397 = shalt.err (!%p1394_p6)
}
 0x64c   :  { %s1398_s19 = scalar_lea.hbm %s2282_s11, 64 }
 0x64d   :  { %p1399_p7 = scmp.ne.s32.totalorder %s2282_s11, %s1398_s19  ;;  %p1402_p8 = scmp.lt.u32.totalorder %s1398_s19, %s2282_s11 }
 0x64f   :  { %p1404_p9 = pnand %p1402_p8, %p1399_p7 }
 0x651   :  { %1407 = shalt.err (!%p1404_p9)
}
 0x652   :  { %921 = dma.vmem_to_hbm [thread:$0]  %s919_s17, 64, %s2282_s11, [#allocation3]  }
 0x653   :  { %s1408_s0 = scalar_lea.vmem %s939_s26, 32  ;;  %p1413_p11 = scmp.lt.s32.totalorder %s939_s26, %s939_s26 }
 0x654   :  { %p1409_p10 = scmp.ne.s32.totalorder %s939_s26, %s1408_s0  ;;  %p1414_p12 = scmp.lt.s32.totalorder %s1408_s0, %s1408_s0 }
 0x656   :  { %p1415_p13 = por %p1414_p12, %p1413_p11 }
 0x658   :  { %p1416_p0 = pnand %p1415_p13, %p1409_p10 }
 0x65a   :  { %1419 = shalt.err (!%p1416_p0)
}
 0x65b   :  { %s1420_s24 = scalar_lea.hbm %s2284_s13, 32 }
 0x65c   :  { %p1421_p1 = scmp.ne.s32.totalorder %s2284_s13, %s1420_s24  ;;  %p1424_p2 = scmp.lt.u32.totalorder %s1420_s24, %s2284_s13 }
 0x65e   :  { %p1426_p3 = pnand %p1424_p2, %p1421_p1 }
 0x660   :  { %1429 = shalt.err (!%p1426_p3)
}
 0x661   :  { %941 = dma.vmem_to_hbm [thread:$0]  %s939_s26, 32, %s2284_s13, [#allocation5]  }
 0x662   :  { %s1497_s3 = smov [#allocation9]  }
 0x663   :  { %s958_s12 = sshll.u32 %s1497_s3, 4  ;;  %s959_s12 = int_to_ptr.vmem [resolvable:$true] %s958_s12 }
 0x664   :  { %s1430_s6 = scalar_lea.vmem %s959_s12, 32  ;;  %p1435_p5 = scmp.lt.s32.totalorder %s959_s12, %s959_s12 }
 0x665   :  { %p1431_p4 = scmp.ne.s32.totalorder %s959_s12, %s1430_s6  ;;  %p1436_p6 = scmp.lt.s32.totalorder %s1430_s6, %s1430_s6 }
 0x667   :  { %p1437_p7 = por %p1436_p6, %p1435_p5 }
 0x669   :  { %p1438_p8 = pnand %p1437_p7, %p1431_p4 }
 0x66b   :  { %1441 = shalt.err (!%p1438_p8)
}
 0x66c   :  { %s1442_s25 = scalar_lea.hbm %s2286_s15, 32 }
 0x66d   :  { %p1443_p9 = scmp.ne.s32.totalorder %s2286_s15, %s1442_s25  ;;  %p1446_p10 = scmp.lt.u32.totalorder %s1442_s25, %s2286_s15 }
 0x66f   :  { %p1448_p11 = pnand %p1446_p10, %p1443_p9 }
 0x671   :  { %1451 = shalt.err (!%p1448_p11)
}
 0x672   :  { %961 = dma.vmem_to_hbm [thread:$0]  %s959_s12, 32, %s2286_s15, [#allocation8]   ;;  %v1007_v13 = vld [vmem:[%s2278_s7] ss:$0 sm:$0xff] }
 0x673   :  { %s1498_s14 = smov [#allocation10]  }
 0x674   :  { %s968_s1 = sshll.u32 %s1498_s14, 4  ;;  %s969_s1 = int_to_ptr.vmem [resolvable:$true] %s968_s1 }
 0x675   :  { %s1452_s20 = scalar_lea.vmem %s969_s1, 32  ;;  %p1457_p13 = scmp.lt.s32.totalorder %s969_s1, %s969_s1 }
 0x676   :  { %p1453_p12 = scmp.ne.s32.totalorder %s969_s1, %s1452_s20  ;;  %p1458_p0 = scmp.lt.s32.totalorder %s1452_s20, %s1452_s20 }
 0x678   :  { %p1459_p1 = por %p1458_p0, %p1457_p13 }
 0x67a   :  { %p1460_p2 = pnand %p1459_p1, %p1453_p12 }
 0x6fd   :  { %v901_v10 = vpop.f32.mrb[6].mxu0 }
 0x6fe   :  { %v902_v15 = vadd.f32 %v1007_v13, %v901_v10  ;;  %v1146_v16 = vpop.f32.mrb[7].mxu0 }
 0x700   :  { %905 = vst [vmem:[#allocation10] sm:$0x3] %v902_v15 }
 0x701   :  { %1463 = shalt.err (!%p1460_p2)
}
 0x702   :  { %s1464_s0 = scalar_lea.hbm %s2287_s16, 32 }
 0x703   :  { %p1465_p3 = scmp.ne.s32.totalorder %s2287_s16, %s1464_s0  ;;  %p1468_p4 = scmp.lt.u32.totalorder %s1464_s0, %s2287_s16 }
 0x705   :  { %p1470_p5 = pnand %p1468_p4, %p1465_p3 }
 0x707   :  { %1473 = shalt.err (!%p1470_p5)
}
 0x708   :  { %971 = dma.vmem_to_hbm [thread:$0]  %s969_s1, 32, %s2287_s16, [#allocation11]  }
 0x709   :  { %1474 = dma.done.wait [#allocation3], 64  }
 0x70a   :  { %1475 = vsyncadd [#allocation3], 4294967232 }
 0x70b   :  { %1476 = dma.done.wait [#allocation5], 64  }
 0x70c   :  { %1477 = vsyncadd [#allocation5], 4294967232 }
 0x70d   :  { %1478 = dma.done.wait [#allocation8], 64  }
 0x70e   :  { %1479 = vsyncadd [#allocation8], 4294967232 }
 0x70f   :  { %1480 = dma.done.wait [#allocation11], 32  }
 0x710   :  { %1481 = vsyncadd [#allocation11], 4294967264 }
 0x711   :  { %996 = vsyncpa [#allocation3], 1 }
 0x712   :  { %997 = vsyncpa [#allocation5], 1 }
 0x713   :  { %998 = vsyncpa [#allocation8], 1 }
 0x714   :  { %999 = vsyncpa [#allocation11], 1 }

</bundles_post_ra>
